<compile_context>
chip_gen: v7x
topology: tpu7x:2x2x1
jax: 0.10.0
libtpu: 0.0.40
codegen_flags: <defaults>
</compile_context>

<pallas_src>
import numpy as np
import jax
import jax.numpy as jnp
from jax.experimental import pallas as pl
from jax.experimental.pallas import tpu as pltpu


def _round_up(x, m):
    return (x + m - 1) // m * m


def cnn_kernel(x_ref, wc_ref, bc_ref, mask_ref, wo_ref, bo_ref, out_ref):
    """Fused windowed conv + bias + ReLU + masked max-pool-over-time + linear head.

    x_ref    : [B_tile, S_pad, E_pad]   bf16  zero-padded embeddings (no im2col)
    wc_ref   : [fs_max, E_pad, N_pad]   bf16  all conv branches packed along lanes;
                                              tap i lives in slot [i]; taps >= fs are 0
    bc_ref   : [1, N_pad]               f32   packed conv biases
    mask_ref : [T_pad, N_pad]           f32   1.0 where (time, lane) is a valid conv output
    wo_ref   : [N_pad, O_pad]           bf16  zero-padded Linear weight
    bo_ref   : [1, O_pad]               f32   zero-padded Linear bias
    out_ref  : [B_tile, O_pad]          f32   lane-dense logits (sliced in wrapper)
    """
    bt, _, e_pad = x_ref.shape
    fs_max, _, n_pad = wc_ref.shape
    t_pad = mask_ref.shape[0]

    # Chunk the batch tile so the f32 activation intermediate stays bounded even for
    # large batch tiles (keeps VMEM/vreg pressure flat; matters most on v7x's 64 MiB).
    cb = bt
    if bt > 64:
        for cand in (64, 32, 16, 8):
            if bt % cand == 0:
                cb = cand
                break
    n_chunks = bt // cb

    bias = bc_ref[...]
    mask = mask_ref[...]

    pooled_chunks = []
    for c in range(n_chunks):                               # static, small trip count
        xc = x_ref[pl.ds(c * cb, cb)]                       # [cb, S_pad, E_pad] bf16
        # Windowed conv as fs_max MXU matmuls accumulated in f32:
        #   acc[(b,t), n] = sum_i emb[b, t+i, :] . Wc[i, :, n]
        acc = jnp.dot(xc[:, 0:t_pad, :].reshape(cb * t_pad, e_pad), wc_ref[0],
                      preferred_element_type=jnp.float32)
        for i in range(1, fs_max):
            xi = xc[:, i:i + t_pad, :].reshape(cb * t_pad, e_pad)
            acc = acc + jnp.dot(xi, wc_ref[i], preferred_element_type=jnp.float32)
        # Bias + ReLU in f32, then zero out time steps past each branch's valid length
        # (and unused lanes). ReLU >= 0 makes 0-masking exact for the max-pool below.
        act = jnp.maximum(acc + bias, 0.0).reshape(cb, t_pad, n_pad) * mask
        pooled_chunks.append(jnp.max(act, axis=1))          # [cb, N_pad]

    pooled = pooled_chunks[0] if n_chunks == 1 else jnp.concatenate(pooled_chunks, axis=0)

    # dropout is identity in eval mode; linear head on the MXU (bf16 in, f32 acc).
    logits = jnp.dot(pooled.astype(jnp.bfloat16), wo_ref[...],
                     preferred_element_type=jnp.float32) + bo_ref[...]
    out_ref[...] = logits.astype(out_ref.dtype)


def cnn_forward(text, params, filter_sizes, n_filters, *, b_tile=128):
    emb_table = params["embedding"]
    _, E = emb_table.shape
    B, S = text.shape
    F = n_filters
    O = params["w_out"].shape[1]
    n_branch = len(filter_sizes)
    fs_max = max(filter_sizes)
    fs_min = min(filter_sizes)
    assert S >= fs_max, "sequence shorter than the largest filter"
    T = S - fs_min + 1                      # max number of window positions over branches

    E_pad = _round_up(E, 128)
    T_pad = _round_up(T, 16)
    S_pad = _round_up(max(S, T_pad + fs_max - 1), 16)
    N = n_branch * F
    N_pad = _round_up(N, 128)
    O_pad = _round_up(O, 128)

    # ---- Batch tiling: cap to the real batch, keep a multiple of 8, size against a
    # conservative VMEM budget, and prefer >= 2 grid steps (v7x has 2 TensorCores). ----
    b_tile = max(8, (min(b_tile, _round_up(B, 8)) // 8) * 8)

    const_bytes = (fs_max * E_pad * N_pad * 2 + T_pad * N_pad * 4
                   + N_pad * O_pad * 2 + (N_pad + O_pad) * 4)

    def step_bytes(bt):
        cb = bt if bt <= 64 else 64
        return (2 * bt * S_pad * E_pad * 2           # x block, double-buffered
                + 2 * const_bytes                    # weights/bias/mask, double-buffered
                + 2 * bt * O_pad * 4                 # out block, double-buffered
                + 2 * cb * T_pad * N_pad * 4)        # f32 activation intermediate

    VMEM_BUDGET = 24 * 1024 * 1024                   # safe under the 32 MiB scoped limit
    while b_tile > 8 and step_bytes(b_tile) > VMEM_BUDGET:
        b_tile = max(8, ((b_tile // 2) // 8) * 8)
    if _round_up(B, b_tile) // b_tile < 2 and b_tile > 8:
        b_tile = max(8, ((b_tile // 2) // 8) * 8)    # >=2 steps so both v7x TCs get work
    B_pad = _round_up(B, b_tile)

    # ---- Embedding lookup (bf16 rows straight from the gather) + a single zero pad ----
    # TODO(synk): fuse this gather into the kernel via PrefetchScalarGridSpec + manual
    # make_async_copy row-gather so the [B,S,E] activation never round-trips via HBM.
    emb = jnp.take(emb_table.astype(jnp.bfloat16), text, axis=0)        # [B, S, E] bf16
    x = jnp.pad(emb, ((0, B_pad - B), (0, S_pad - S), (0, E_pad - E)))

    # ---- Pack all conv branches into one lane-dense, zero-padded weight slab ----
    wc = np.zeros((fs_max, E_pad, N_pad), np.float32)
    bc = np.zeros((1, N_pad), np.float32)
    mask = np.zeros((T_pad, N_pad), np.float32)
    for k, fs in enumerate(filter_sizes):
        wk = np.asarray(params[f"conv_w_{k}"], np.float32)              # [fs, E, F]
        wc[:fs, :E, k * F:(k + 1) * F] = wk
        bc[0, k * F:(k + 1) * F] = np.asarray(params[f"conv_b_{k}"]).reshape(F)
        mask[: S - fs + 1, k * F:(k + 1) * F] = 1.0                     # valid times only
    wo = np.zeros((N_pad, O_pad), np.float32)
    wo[:N, :O] = np.asarray(params["w_out"], np.float32)
    bo = np.zeros((1, O_pad), np.float32)
    bo[0, :O] = np.asarray(params["b_out"]).reshape(O)

    wc = jnp.asarray(wc, jnp.bfloat16)
    wo = jnp.asarray(wo, jnp.bfloat16)
    bc = jnp.asarray(bc)
    bo = jnp.asarray(bo)
    mask = jnp.asarray(mask)

    flops = 2 * B_pad * T_pad * fs_max * E_pad * N_pad + 2 * B_pad * N_pad * O_pad
    bytes_accessed = (B_pad * S_pad * E_pad * 2 + const_bytes + B_pad * O_pad * 4)
    cost = pl.CostEstimate(flops=int(flops), transcendentals=0,
                           bytes_accessed=int(bytes_accessed))

    out = pl.pallas_call(
        cnn_kernel,
        out_shape=jax.ShapeDtypeStruct((B_pad, O_pad), jnp.float32),
        grid=(B_pad // b_tile,),
        in_specs=[
            pl.BlockSpec((b_tile, S_pad, E_pad), lambda i: (i, 0, 0)),
            # Constant operands: index_map is grid-invariant so Pallas skips re-DMA
            # between steps.
            # TODO(synk): single-buffer these via pipeline_mode=pl.Buffered(1) once that
            # path is verified on this pallas_call lowering (saves ~200 KiB of VMEM).
            pl.BlockSpec((fs_max, E_pad, N_pad), lambda i: (0, 0, 0)),
            pl.BlockSpec((1, N_pad), lambda i: (0, 0)),
            pl.BlockSpec((T_pad, N_pad), lambda i: (0, 0)),
            pl.BlockSpec((N_pad, O_pad), lambda i: (0, 0)),
            pl.BlockSpec((1, O_pad), lambda i: (0, 0)),
        ],
        out_specs=pl.BlockSpec((b_tile, O_pad), lambda i: (i, 0)),
        compiler_params=pltpu.CompilerParams(
            dimension_semantics=("parallel",),
            vmem_limit_bytes=32 * 1024 * 1024),
        cost_estimate=cost,
    )(x, wc, bc, mask, wo, bo)

    return out[:B, :O]


if __name__ == "__main__":
    # Small, forward-consistent shapes.
    vocab_size, embedding_dim = 50, 32
    n_filters, filter_sizes = 8, (3, 4, 5)
    output_dim, pad_idx = 2, 0
    B, S = 2, 16

    key = jax.random.PRNGKey(0)
    keys = jax.random.split(key, 3 + 2 * len(filter_sizes) + 2)

    # Deterministic synthetic parameters (shapes match nn.Module __init__).
    emb_table = jax.random.normal(keys[0], (vocab_size, embedding_dim), jnp.float32)
    emb_table = emb_table.at[pad_idx].set(0.0)           # nn.Embedding padding_idx row
    params = {"embedding": emb_table}
    for k, fs in enumerate(filter_sizes):
        params[f"conv_w_{k}"] = 0.1 * jax.random.normal(
            keys[1 + 2 * k], (fs, embedding_dim, n_filters), jnp.float32)
        params[f"conv_b_{k}"] = 0.1 * jax.random.normal(
            keys[2 + 2 * k], (1, n_filters), jnp.float32)
    params["w_out"] = 0.1 * jax.random.normal(
        keys[1 + 2 * len(filter_sizes)],
        (len(filter_sizes) * n_filters, output_dim), jnp.float32)
    params["b_out"] = 0.1 * jax.random.normal(
        keys[2 + 2 * len(filter_sizes)], (1, output_dim), jnp.float32)

    text = jax.random.randint(keys[-1], (B, S), 0, vocab_size, dtype=jnp.int32)

    out = jax.block_until_ready(cnn_forward(text, params, filter_sizes, n_filters))

    # Pure-JAX f32 reference for correctness (kernel uses bf16 MXU inputs -> loose tol).
    emb = jnp.take(params["embedding"], text, axis=0)
    feats = []
    for k, fs in enumerate(filter_sizes):
        L = S - fs + 1
        acc = jnp.zeros((B, L, n_filters), jnp.float32)
        for i in range(fs):
            acc = acc + jnp.einsum("ble,ef->blf", emb[:, i:i + L, :],
                                   params[f"conv_w_{k}"][i])
        act = jnp.maximum(acc + params[f"conv_b_{k}"][None, :, :], 0.0)
        feats.append(jnp.max(act, axis=1))
    ref = jnp.concatenate(feats, axis=1) @ params["w_out"] + params["b_out"]

    assert out.shape == (B, output_dim)
    assert jnp.allclose(out, ref, atol=5e-2, rtol=5e-2), (
        f"max abs diff {jnp.max(jnp.abs(out - ref))}")

    print("KERNEL_OK")
</pallas_src>

<mosaic_0001>
module attributes {stable_mosaic.version = 11 : i64} {
  func.func @cnn_kernel(%arg0: i32, %arg1: memref<8x32x128xbf16, #tpu.memory_space<vmem>>, %arg2: memref<5x128x128xbf16, #tpu.memory_space<vmem>>, %arg3: memref<1x128xf32, #tpu.memory_space<vmem>>, %arg4: memref<16x128xf32, #tpu.memory_space<vmem>>, %arg5: memref<128x128xbf16, #tpu.memory_space<vmem>>, %arg6: memref<1x128xf32, #tpu.memory_space<vmem>>, %arg7: memref<8x128xf32, #tpu.memory_space<vmem>>) attributes {dimension_semantics = [#tpu.dimension_semantics<parallel>], iteration_bounds = array<i64: 1>, scalar_prefetch = 0 : i64, scratch_operands = 0 : i64, tpu.core_type = #tpu.core_type<tc>, window_params = [{transform_indices = @transform_0, window_bounds = array<i64: 8, 32, 128>}, {pipeline_mode = #tpu.pipeline_mode<synchronous>, transform_indices = @transform_1, window_bounds = array<i64: 5, 128, 128>}, {pipeline_mode = #tpu.pipeline_mode<synchronous>, transform_indices = @transform_2, window_bounds = array<i64: 1, 128>}, {pipeline_mode = #tpu.pipeline_mode<synchronous>, transform_indices = @transform_3, window_bounds = array<i64: 16, 128>}, {pipeline_mode = #tpu.pipeline_mode<synchronous>, transform_indices = @transform_4, window_bounds = array<i64: 128, 128>}, {pipeline_mode = #tpu.pipeline_mode<synchronous>, transform_indices = @transform_5, window_bounds = array<i64: 1, 128>}, {transform_indices = @transform_6, window_bounds = array<i64: 8, 128>}]} {
    %c0 = arith.constant 0 : index
    %c0_0 = arith.constant 0 : index
    %0 = vector.load %arg3[%c0, %c0_0] : memref<1x128xf32, #tpu.memory_space<vmem>>, vector<1x128xf32>
    %c0_1 = arith.constant 0 : index
    %c0_2 = arith.constant 0 : index
    %1 = vector.load %arg4[%c0_1, %c0_2] : memref<16x128xf32, #tpu.memory_space<vmem>>, vector<16x128xf32>
    %c0_3 = arith.constant 0 : index
    %c0_4 = arith.constant 0 : index
    %c0_5 = arith.constant 0 : index
    %2 = vector.load %arg1[%c0_3, %c0_4, %c0_5] : memref<8x32x128xbf16, #tpu.memory_space<vmem>>, vector<8x32x128xbf16>
    %3 = vector.extract_strided_slice %2 {offsets = [0, 0, 0], sizes = [8, 16, 128], strides = [1, 1, 1]} : vector<8x32x128xbf16> to vector<8x16x128xbf16>
    %4 = vector.shape_cast %3 : vector<8x16x128xbf16> to vector<128x128xbf16>
    %c0_6 = arith.constant 0 : index
    %c0_7 = arith.constant 0 : index
    %c0_8 = arith.constant 0 : index
    %5 = vector.load %arg2[%c0_6, %c0_7, %c0_8] : memref<5x128x128xbf16, #tpu.memory_space<vmem>>, vector<1x128x128xbf16>
    %6 = vector.shape_cast %5 : vector<1x128x128xbf16> to vector<128x128xbf16>
    %cst = arith.constant dense<0.000000e+00> : vector<128x128xf32>
    %7 = tpu.matmul %4, %6, %cst {dimension_numbers = #tpu.dot_dimension_numbers<[1], [0], [0], [1], [0, 0, 1, 1], [], []>} : vector<128x128xbf16>, vector<128x128xbf16>, vector<128x128xf32> -> vector<128x128xf32>
    %8 = vector.extract_strided_slice %2 {offsets = [0, 1, 0], sizes = [8, 16, 128], strides = [1, 1, 1]} : vector<8x32x128xbf16> to vector<8x16x128xbf16>
    %9 = vector.shape_cast %8 : vector<8x16x128xbf16> to vector<128x128xbf16>
    %c1 = arith.constant 1 : index
    %c0_9 = arith.constant 0 : index
    %c0_10 = arith.constant 0 : index
    %10 = vector.load %arg2[%c1, %c0_9, %c0_10] : memref<5x128x128xbf16, #tpu.memory_space<vmem>>, vector<1x128x128xbf16>
    %11 = vector.shape_cast %10 : vector<1x128x128xbf16> to vector<128x128xbf16>
    %cst_11 = arith.constant dense<0.000000e+00> : vector<128x128xf32>
    %12 = tpu.matmul %9, %11, %cst_11 {dimension_numbers = #tpu.dot_dimension_numbers<[1], [0], [0], [1], [0, 0, 1, 1], [], []>} : vector<128x128xbf16>, vector<128x128xbf16>, vector<128x128xf32> -> vector<128x128xf32>
    %13 = arith.addf %7, %12 : vector<128x128xf32>
    %14 = vector.extract_strided_slice %2 {offsets = [0, 2, 0], sizes = [8, 16, 128], strides = [1, 1, 1]} : vector<8x32x128xbf16> to vector<8x16x128xbf16>
    %15 = vector.shape_cast %14 : vector<8x16x128xbf16> to vector<128x128xbf16>
    %c2 = arith.constant 2 : index
    %c0_12 = arith.constant 0 : index
    %c0_13 = arith.constant 0 : index
    %16 = vector.load %arg2[%c2, %c0_12, %c0_13] : memref<5x128x128xbf16, #tpu.memory_space<vmem>>, vector<1x128x128xbf16>
    %17 = vector.shape_cast %16 : vector<1x128x128xbf16> to vector<128x128xbf16>
    %cst_14 = arith.constant dense<0.000000e+00> : vector<128x128xf32>
    %18 = tpu.matmul %15, %17, %cst_14 {dimension_numbers = #tpu.dot_dimension_numbers<[1], [0], [0], [1], [0, 0, 1, 1], [], []>} : vector<128x128xbf16>, vector<128x128xbf16>, vector<128x128xf32> -> vector<128x128xf32>
    %19 = arith.addf %13, %18 : vector<128x128xf32>
    %20 = vector.extract_strided_slice %2 {offsets = [0, 3, 0], sizes = [8, 16, 128], strides = [1, 1, 1]} : vector<8x32x128xbf16> to vector<8x16x128xbf16>
    %21 = vector.shape_cast %20 : vector<8x16x128xbf16> to vector<128x128xbf16>
    %c3 = arith.constant 3 : index
    %c0_15 = arith.constant 0 : index
    %c0_16 = arith.constant 0 : index
    %22 = vector.load %arg2[%c3, %c0_15, %c0_16] : memref<5x128x128xbf16, #tpu.memory_space<vmem>>, vector<1x128x128xbf16>
    %23 = vector.shape_cast %22 : vector<1x128x128xbf16> to vector<128x128xbf16>
    %cst_17 = arith.constant dense<0.000000e+00> : vector<128x128xf32>
    %24 = tpu.matmul %21, %23, %cst_17 {dimension_numbers = #tpu.dot_dimension_numbers<[1], [0], [0], [1], [0, 0, 1, 1], [], []>} : vector<128x128xbf16>, vector<128x128xbf16>, vector<128x128xf32> -> vector<128x128xf32>
    %25 = arith.addf %19, %24 : vector<128x128xf32>
    %26 = vector.extract_strided_slice %2 {offsets = [0, 4, 0], sizes = [8, 16, 128], strides = [1, 1, 1]} : vector<8x32x128xbf16> to vector<8x16x128xbf16>
    %27 = vector.shape_cast %26 : vector<8x16x128xbf16> to vector<128x128xbf16>
    %c4 = arith.constant 4 : index
    %c0_18 = arith.constant 0 : index
    %c0_19 = arith.constant 0 : index
    %28 = vector.load %arg2[%c4, %c0_18, %c0_19] : memref<5x128x128xbf16, #tpu.memory_space<vmem>>, vector<1x128x128xbf16>
    %29 = vector.shape_cast %28 : vector<1x128x128xbf16> to vector<128x128xbf16>
    %cst_20 = arith.constant dense<0.000000e+00> : vector<128x128xf32>
    %30 = tpu.matmul %27, %29, %cst_20 {dimension_numbers = #tpu.dot_dimension_numbers<[1], [0], [0], [1], [0, 0, 1, 1], [], []>} : vector<128x128xbf16>, vector<128x128xbf16>, vector<128x128xf32> -> vector<128x128xf32>
    %31 = arith.addf %25, %30 : vector<128x128xf32>
    %32 = vector.broadcast %0 : vector<1x128xf32> to vector<128x128xf32>
    %33 = arith.addf %31, %32 : vector<128x128xf32>
    %cst_21 = arith.constant 0.000000e+00 : f32
    %34 = vector.broadcast %cst_21 : f32 to vector<128x128xf32>
    %35 = arith.maximumf %33, %34 : vector<128x128xf32>
    %36 = vector.shape_cast %35 : vector<128x128xf32> to vector<8x16x128xf32>
    %37 = vector.shape_cast %1 : vector<16x128xf32> to vector<1x16x128xf32>
    %38 = vector.broadcast %37 : vector<1x16x128xf32> to vector<8x16x128xf32>
    %39 = arith.mulf %36, %38 : vector<8x16x128xf32>
    %cst_22 = arith.constant dense<0xFF800000> : vector<8x128xf32>
    %40 = vector.multi_reduction <maximumf>, %39, %cst_22 [1] : vector<8x16x128xf32> to vector<8x128xf32>
    %41 = arith.truncf %40 : vector<8x128xf32> to vector<8x128xbf16>
    %c0_23 = arith.constant 0 : index
    %c0_24 = arith.constant 0 : index
    %42 = vector.load %arg5[%c0_23, %c0_24] : memref<128x128xbf16, #tpu.memory_space<vmem>>, vector<128x128xbf16>
    %cst_25 = arith.constant dense<0.000000e+00> : vector<8x128xf32>
    %43 = tpu.matmul %41, %42, %cst_25 {dimension_numbers = #tpu.dot_dimension_numbers<[1], [0], [0], [1], [0, 0, 1, 1], [], []>} : vector<8x128xbf16>, vector<128x128xbf16>, vector<8x128xf32> -> vector<8x128xf32>
    %c0_26 = arith.constant 0 : index
    %c0_27 = arith.constant 0 : index
    %44 = vector.load %arg6[%c0_26, %c0_27] : memref<1x128xf32, #tpu.memory_space<vmem>>, vector<1x128xf32>
    %45 = vector.broadcast %44 : vector<1x128xf32> to vector<8x128xf32>
    %46 = arith.addf %43, %45 : vector<8x128xf32>
    %c0_28 = arith.constant 0 : index
    %c0_29 = arith.constant 0 : index
    %47 = vector.load %arg7[%c0_28, %c0_29] : memref<8x128xf32, #tpu.memory_space<vmem>>, vector<8x128xf32>
    tpu.vector_store %arg7[%c0_28, %c0_29], %46 {strides = array<i32>} : memref<8x128xf32, #tpu.memory_space<vmem>>, vector<8x128xf32>,
    return
  }
  func.func @transform_0(%arg0: i32) -> (i32, i32, i32) {
    %c0_i32 = arith.constant 0 : i32
    %c0_i32_0 = arith.constant 0 : i32
    %c0_i32_1 = arith.constant 0 : i32
    return %arg0, %c0_i32, %c0_i32_0 : i32, i32, i32
  }
  func.func @transform_1(%arg0: i32) -> (i32, i32, i32) {
    %c0_i32 = arith.constant 0 : i32
    %c0_i32_0 = arith.constant 0 : i32
    %c0_i32_1 = arith.constant 0 : i32
    %c0_i32_2 = arith.constant 0 : i32
    return %c0_i32, %c0_i32_0, %c0_i32_1 : i32, i32, i32
  }
  func.func @transform_2(%arg0: i32) -> (i32, i32) {
    %c0_i32 = arith.constant 0 : i32
    %c0_i32_0 = arith.constant 0 : i32
    %c0_i32_1 = arith.constant 0 : i32
    return %c0_i32, %c0_i32_0 : i32, i32
  }
  func.func @transform_3(%arg0: i32) -> (i32, i32) {
    %c0_i32 = arith.constant 0 : i32
    %c0_i32_0 = arith.constant 0 : i32
    %c0_i32_1 = arith.constant 0 : i32
    return %c0_i32, %c0_i32_0 : i32, i32
  }
  func.func @transform_4(%arg0: i32) -> (i32, i32) {
    %c0_i32 = arith.constant 0 : i32
    %c0_i32_0 = arith.constant 0 : i32
    %c0_i32_1 = arith.constant 0 : i32
    return %c0_i32, %c0_i32_0 : i32, i32
  }
  func.func @transform_5(%arg0: i32) -> (i32, i32) {
    %c0_i32 = arith.constant 0 : i32
    %c0_i32_0 = arith.constant 0 : i32
    %c0_i32_1 = arith.constant 0 : i32
    return %c0_i32, %c0_i32_0 : i32, i32
  }
  func.func @transform_6(%arg0: i32) -> (i32, i32) {
    %c0_i32 = arith.constant 0 : i32
    %c0_i32_0 = arith.constant 0 : i32
    return %arg0, %c0_i32 : i32, i32
  }
}

</mosaic_0001>

<bundles_post_ra>
// kernel: tpu_custom_call.1
= control target key start
LH: loop header
LB: loop body
LE: loop exit
PB: predicated region body
PF: predicated region fallthrough
CT: control target
= control target key end

     0   :  { %11 = vsyncpa [#allocation3], 0  ;;  %s3141_s0 = inlined_call_operand.hbm [shape: bf16[8,32,128], index: 0, kind: input, shape index: {}]   ;;  %s3142_s1 = inlined_call_operand.hbm [shape: bf16[5,128,128], index: 1, kind: input, shape index: {}]   ;;  %s3143_s2 = inlined_call_operand.vmem [shape: f32[1,128], index: 2, kind: input, shape index: {}]   ;;  %s3144_s3 = inlined_call_operand.hbm [shape: f32[16,128], index: 3, kind: input, shape index: {}]   ;;  %s3145_s4 = inlined_call_operand.hbm [shape: bf16[128,128], index: 4, kind: input, shape index: {}]   ;;  %s3146_s5 = inlined_call_operand.vmem [shape: f32[1,128], index: 5, kind: input, shape index: {}]   ;;  %s3147_s6 = inlined_call_operand.hbm [shape: f32[8,128], index: 6, kind: output, shape index: {}]  }
   0x1   :  { %12 = vsyncpa [#allocation6], 0 }
   0x2   :  { %13 = vsyncpa [#allocation9], 0 }
   0x3   :  { %14 = vsyncpa [#allocation4], 0  ;;  %s2493_s21 = smov [#allocation5]   ;;  %s2494_s23 = smov [#allocation2]  }
   0x4   :  { %s32_s22 = sshll.u32 %s2493_s21, 4  ;;  %s20_s24 = sshll.u32 %s2494_s23, 4  ;;  %s33_s22 = int_to_ptr.vmem [resolvable:$true] %s32_s22  ;;  %s2539_s24 = int_to_ptr.vmem [resolvable:$true] %s20_s24 }
   0x5   :  { %s2375_s27 = scalar_lea.hbm %s3142_s1, 5120 }
   0x6   :  { %p2376_p0 = scmp.ne.s32.totalorder %s3142_s1, %s2375_s27  ;;  %p2379_p1 = scmp.lt.u32.totalorder %s2375_s27, %s3142_s1 }
   0x8   :  { %p2381_p2 = pnand %p2379_p1, %p2376_p0 }
   0xa   :  { %2384 = shalt.err (!%p2381_p2)
}
   0xb   :  { %s2385_s8 = scalar_lea.vmem %s33_s22, 5120  ;;  %p2390_p4 = scmp.lt.s32.totalorder %s33_s22, %s33_s22 }
   0xc   :  { %p2386_p3 = scmp.ne.s32.totalorder %s33_s22, %s2385_s8  ;;  %p2391_p5 = scmp.lt.s32.totalorder %s2385_s8, %s2385_s8 }
   0xe   :  { %p2392_p6 = por %p2391_p5, %p2390_p4 }
  0x10   :  { %p2393_p7 = pnand %p2392_p6, %p2386_p3 }
  0x12   :  { %2396 = shalt.err (!%p2393_p7)
}
  0x13   :  { %s2495_s9 = smov 64   ;;  %s2496_s10 = smov 4  }
  0x14   :  { %38 = dma.hbm_to_vmem [thread:$0]  %s3142_s1, 5120, %s33_s22, [#allocation6], %s2495_s9, %s2495_s9, %s2496_s10  }
  0x15   :  { %s2397_s15 = scalar_lea.hbm %s3141_s0, 2048 }
  0x16   :  { %p2398_p8 = scmp.ne.s32.totalorder %s3141_s0, %s2397_s15  ;;  %p2401_p9 = scmp.lt.u32.totalorder %s2397_s15, %s3141_s0 }
  0x18   :  { %p2403_p10 = pnand %p2401_p9, %p2398_p8 }
  0x1a   :  { %2406 = shalt.err (!%p2403_p10)
}
  0x1b   :  { %s2407_s20 = scalar_lea.vmem %s2539_s24, 2048  ;;  %p2412_p12 = scmp.lt.s32.totalorder %s2539_s24, %s2539_s24 }
  0x1c   :  { %p2408_p11 = scmp.ne.s32.totalorder %s2539_s24, %s2407_s20  ;;  %p2413_p13 = scmp.lt.s32.totalorder %s2407_s20, %s2407_s20 }
  0x1e   :  { %p2414_p0 = por %p2413_p13, %p2412_p12 }
  0x20   :  { %p2415_p1 = pnand %p2414_p0, %p2408_p11 }
  0x22   :  { %2418 = shalt.err (!%p2415_p1)
}
  0x23   :  { %26 = dma.hbm_to_vmem [thread:$0]  %s3141_s0, 2048, %s2539_s24, [#allocation3], %s2495_s9, %s2495_s9, %s2496_s10  }
  0x24   :  { %s2497_s22 = smov [#allocation7]   ;;  %s2419_s27 = scalar_lea.hbm %s3144_s3, 256 }
  0x25   :  { %s46_s23 = sshll.u32 %s2497_s22, 4  ;;  %p2420_p2 = scmp.ne.s32.totalorder %s3144_s3, %s2419_s27  ;;  %s47_s23 = int_to_ptr.vmem [resolvable:$true] %s46_s23 }
  0x26   :  { %p2423_p3 = scmp.lt.u32.totalorder %s2419_s27, %s3144_s3 }
  0x28   :  { %p2425_p4 = pnand %p2423_p3, %p2420_p2 }
  0x2a   :  { %2428 = shalt.err (!%p2425_p4)
}
  0x2b   :  { %s2429_s8 = scalar_lea.vmem %s47_s23, 256  ;;  %p2434_p6 = scmp.lt.s32.totalorder %s47_s23, %s47_s23 }
  0x2c   :  { %p2430_p5 = scmp.ne.s32.totalorder %s47_s23, %s2429_s8  ;;  %p2435_p7 = scmp.lt.s32.totalorder %s2429_s8, %s2429_s8 }
  0x2e   :  { %p2436_p8 = por %p2435_p7, %p2434_p6 }
  0x30   :  { %p2437_p9 = pnand %p2436_p8, %p2430_p5 }
  0x32   :  { %2440 = shalt.err (!%p2437_p9)
}
  0x33   :  { %s2498_s0 = smov 128   ;;  %s2499_s24 = smov 8  }
  0x34   :  { %52 = dma.hbm_to_vmem [thread:$0]  %s3144_s3, 256, %s47_s23, [#allocation6], %s2498_s0, %s2498_s0, %s2499_s24  }
  0x35   :  { %s2500_s13 = smov [#allocation8]   ;;  %s2441_s17 = scalar_lea.hbm %s3145_s4, 1024 }
  0x36   :  { %s58_s14 = sshll.u32 %s2500_s13, 4  ;;  %p2442_p10 = scmp.ne.s32.totalorder %s3145_s4, %s2441_s17  ;;  %s59_s14 = int_to_ptr.vmem [resolvable:$true] %s58_s14 }
  0x37   :  { %p2445_p11 = scmp.lt.u32.totalorder %s2441_s17, %s3145_s4 }
  0x39   :  { %p2447_p12 = pnand %p2445_p11, %p2442_p10 }
  0x3b   :  { %2450 = shalt.err (!%p2447_p12)
}
  0x3c   :  { %s2451_s21 = scalar_lea.vmem %s59_s14, 1024  ;;  %p2456_p0 = scmp.lt.s32.totalorder %s59_s14, %s59_s14 }
  0x3d   :  { %p2452_p13 = scmp.ne.s32.totalorder %s59_s14, %s2451_s21  ;;  %p2457_p1 = scmp.lt.s32.totalorder %s2451_s21, %s2451_s21 }
  0x3f   :  { %p2458_p2 = por %p2457_p1, %p2456_p0 }
  0x41   :  { %p2459_p3 = pnand %p2458_p2, %p2452_p13 }
  0x43   :  { %2462 = shalt.err (!%p2459_p3)
}
  0x44   :  { %64 = dma.hbm_to_vmem [thread:$0]  %s3145_s4, 1024, %s59_s14, [#allocation9], %s2495_s9, %s2495_s9, %s2496_s10  }
  0x45   :  { %2485 = dma.done.wait [#allocation3], 2048  }
  0x46   :  { %2486 = vsyncadd [#allocation3], 4294965248 }
  0x47   :  { %2487 = dma.done.wait [#allocation6], 5376  }
  0x48   :  { %2488 = vsyncadd [#allocation6], 4294961920 }
  0x49   :  { %2489 = dma.done.wait [#allocation9], 1024  }
  0x4a   :  { %2490 = vsyncadd [#allocation9], 4294966272  ;;  %v2313_v0 = vld [vmem:[#allocation5 + $0x40] sm:$0xff]   ;;  %v2315_v2 = vld [vmem:[#allocation5 + $0x48] sm:$0xff]   ;;  %vm123_vm0 = vsmask.f32 3328 }
  0x4b   :  { %v2314_v1 = vld [vmem:[#allocation5 + $0x80] sm:$0xff]   ;;  %2058 = vmatprep.subr.bf16.mxu1 %v2313_v0  ;;  %v2316_v3 = vld [vmem:[#allocation5 + $0x88] sm:$0xff]   ;;  %v2317_v4 = vld [vmem:[#allocation5 + $0x50] sm:$0xff]   ;;  %vm124_vm1 = vsmask.f32 7440  ;;  %vm713_vm2 = vcmask 1042432  }
  0x4c   :  { %2122 = vmatprep.subr.bf16.mxu0 %v2314_v1  ;;  %2059 = vmatpush3.bf16.msra.mxu1 %v2313_v0  ;;  %v2318_v5 = vld [vmem:[#allocation5 + $0x90] sm:$0xff]   ;;  %v2319_v6 = vld [vmem:[#allocation5 + $0x58] sm:$0xff]   ;;  %v2321_v8 = vld [vmem:[#allocation5 + $0x60] sm:$0xff]   ;;  %vm714_vm3 = vcmask 1046532   ;;  %vm982_vm6 = vsmask.f32 2304 }
  0x4d   :  { %2123 = vmatpush3.bf16.msra.mxu0 %v2314_v1  ;;  %2060 = vmatprep.subr.bf16.mxu1 %v2315_v2  ;;  %v2320_v7 = vld [vmem:[#allocation5 + $0x98] sm:$0xff]   ;;  %v2322_v9 = vld [vmem:[#allocation5 + $0xa0] sm:$0xff]   ;;  %v2323_v10 = vld [vmem:[#allocation5 + $0x68] sm:$0xff]   ;;  %vm983_vm7 = vsmask.f32 6416  ;;  %vm1315_vm9 = vcmask 1041408  }
  0x4e   :  { %2124 = vmatprep.subr.bf16.mxu0 %v2316_v3  ;;  %v2324_v11 = vld [vmem:[#allocation5 + $0xa8] sm:$0xff]   ;;  %v2603_v12 = vld [vmem:[#allocation2] sm:$0xf]  ;;  %v2605_v13 = vld [vmem:[#allocation2 + $0x4] sm:$0xf]  ;;  %vm1316_vm10 = vcmask 1045508  }
  0x4f   :  { %v2607_v14 = vld [vmem:[#allocation2 + $0x8] sm:$0xf]  ;;  %v127_v15 = vshrl.u32 %v2603_v12, 16  ;;  %v130_v16 = vshll.u32 %v2603_v12, 16  ;;  %v136_v17 = vshll.u32 %v2605_v13, 16  ;;  %v140_v18 = vshrl.u32 %v2605_v13, 16  ;;  %vm2614_vm4 = vmor %vm713_vm2, %vm714_vm3 }
  0x50   :  { %2061 = vmatpush3.bf16.msra.mxu1 %v2315_v2  ;;  %v2618_v20 = vld [vmem:[#allocation2 + $0x10] sm:$0xf]  ;;  %v146_v21 = vshll.u32 %v2607_v14, 16  ;;  %v1895_v22 = vrot.slane %v2603_v12, 9  ;;  %v718_v23 = vrot.slane %v2605_v13, 5  ;;  %v721_v24 = vrot.slane %v2607_v14, 5  ;;  %vm2641_vm5 = vmor %vm123_vm0, %vm124_vm1 }
  0x51   :  { %2125 = vmatpush3.bf16.msra.mxu0 %v2316_v3  ;;  %2062 = vmatprep.subr.bf16.mxu1 %v2317_v4  ;;  %v2624_v25 = vld [vmem:[#allocation2 + $0x14] sm:$0xf]  ;;  %v129_v26 = vrot.slane %v127_v15, 4  ;;  %v132_v27 = vrot.slane %v130_v16, 5  ;;  %v138_v28 = vrot.slane %v136_v17, 5  ;;  %v142_v29 = vrot.slane %v140_v18, 4  ;;  %vm2889_vm8 = vmor %vm982_vm6, %vm983_vm7 }
  0x52   :  { %2126 = vmatprep.subr.bf16.mxu0 %v2318_v5  ;;  %v2632_v30 = vld [vmem:[#allocation2 + $0x18] sm:$0xf]  ;;  %v2325_v31 = vld [vmem:[#allocation5 + $0x70] sm:$0xff]   ;;  %v148_v33 = vrot.slane %v146_v21, 5  ;;  %v2634_v34 = vrot.slane %v136_v17, 6  ;;  %v719_v35 = vsel %vm2614_vm4, %v1895_v22, %v718_v23  ;;  %v720_v38 = vrot.slane %v718_v23, 4  ;;  %vm3006_vm11 = vmor %vm1315_vm9, %vm1316_vm10 }
  0x53   :  { %v2326_v32 = vld [vmem:[#allocation5 + $0xb0] sm:$0xff]   ;;  %v133_v36 = vor.u32 %v132_v27, %v129_v26  ;;  %v143_v37 = vor.u32 %v142_v29, %v138_v28  ;;  %v151_v39 = vshrl.u32 %v2618_v20, 16  ;;  %v154_v41 = vshll.u32 %v2618_v20, 16  ;;  %v2327_v45 = vld [vmem:[#allocation5 + $0x78] sm:$0xff]   ;;  %v2659_v63 = vld [vmem:[#allocation2 + $0x20] sm:$0xf] }
  0x54   :  { %2063 = vmatpush3.bf16.msra.mxu1 %v2317_v4  ;;  %v160_v42 = vshll.u32 %v2624_v25, 16  ;;  %v164_v43 = vshrl.u32 %v2624_v25, 16  ;;  %v170_v44 = vshll.u32 %v2632_v30, 16  ;;  %v722_v48 = vsel %vm2614_vm4, %v720_v38, %v721_v24  ;;  %v2328_v50 = vld [vmem:[#allocation5 + $0xb8] sm:$0xff]   ;;  %v2329_v4 = vld [vmem:[#allocation5] sm:$0xff]   ;;  %s2503_s23 = smov [#allocation10]  }
  0x55   :  { %2127 = vmatpush3.bf16.msra.mxu0 %v2318_v5  ;;  %2064 = vmatprep.subr.bf16.mxu1 %v2319_v6  ;;  %v134_v46 = vrot.slane %v133_v36, 4  ;;  %v144_v47 = vrot.slane %v143_v37, 4  ;;  %v153_v49 = vrot.slane %v151_v39, 4  ;;  %v1903_v51 = vcombine.low %v719_v35, %v722_v48  ;;  %v2330_v5 = vld [vmem:[#allocation5 + $0xc0] sm:$0xff]   ;;  %v2673_v22 = vld [vmem:[#allocation2 + $0x28] sm:$0xf] }
  0x56   :  { %2128 = vmatprep.subr.bf16.mxu0 %v2320_v7  ;;  %v156_v52 = vrot.slane %v154_v41, 5  ;;  %v162_v53 = vrot.slane %v160_v42, 5  ;;  %v166_v54 = vrot.slane %v164_v43, 4  ;;  %v2655_v57 = vrot.slane %v146_v21, 6  ;;  %v2682_v29 = vld [vmem:[#allocation2 + $0x30] sm:$0xf] }
  0x57   :  { %v139_v55 = vsel %vm2641_vm5, %v134_v46, %v138_v28  ;;  %v149_v56 = vsel %vm2641_vm5, %v144_v47, %v148_v33  ;;  %v172_v58 = vrot.slane %v170_v44, 5  ;;  %2138 = vmatprep.mubr.bf16.mxu0 %v1903_v51  ;;  %v2657_v62 = vrot.slane %v151_v39, 5  ;;  %v2689_v35 = vld [vmem:[#allocation2 + $0x34] sm:$0xf]  ;;  %v2331_v37 = vld [vmem:[#allocation5 + $0x8] sm:$0xff]   ;;  %s1852_s25 = sshll.u32 %s2503_s23, 4  ;;  %s1853_s25 = int_to_ptr.vmem [resolvable:$true] %s1852_s25 }
  0x58   :  { %2065 = vmatpush3.bf16.msra.mxu1 %v2319_v6  ;;  %v1863_v59 = vcombine.low %v139_v55, %v149_v56  ;;  %v157_v60 = vor.u32 %v156_v52, %v153_v49  ;;  %v167_v61 = vor.u32 %v166_v54, %v162_v53  ;;  %v2661_v0 = vrot.slane %v154_v41, 6  ;;  %s2463_s26 = scalar_lea.vmem %s1853_s25, 128  ;;  %p2468_p5 = scmp.lt.s32.totalorder %s1853_s25, %s1853_s25 }
  0x59   :  { %2129 = vmatpush3.bf16.msra.mxu0 %v2320_v7  ;;  %2066 = vmatprep.subr.bf16.mxu1 %v2321_v8  ;;  %v1004_v1 = vrot.slane %v164_v43, 5  ;;  %v1005_v2 = vrot.slane %v160_v42, 6  ;;  %v1009_v3 = vshrl.u32 %v2632_v30, 16  ;;  %v2670_v17 = vrot.slane %v170_v44, 6  ;;  %v2696_v42 = vld [vmem:[#allocation2 + $0x38] sm:$0xf]  ;;  %p2464_p4 = scmp.ne.s32.totalorder %s1853_s25, %s2463_s26  ;;  %p2469_p6 = scmp.lt.s32.totalorder %s2463_s26, %s2463_s26 }
  0x5a   :  { %2130 = vmatprep.subr.bf16.mxu0 %v2322_v9  ;;  %v158_v6 = vrot.slane %v157_v60, 4  ;;  %v168_v7 = vrot.slane %v167_v61, 4  ;;  %2074 = vmatprep.mubr.bf16.mxu1 %v1863_v59  ;;  %v728_v21 = vrot.slane %v2632_v30, 5  ;;  %v175_v23 = vshrl.u32 %v2659_v63, 16  ;;  %v2332_v44 = vld [vmem:[#allocation5 + $0xc8] sm:$0xff]  }
  0x5b   :  { %v178_v33 = vshll.u32 %v2659_v63, 16  ;;  %v194_v41 = vshll.u32 %v2673_v22, 16  ;;  %v1897_v46 = vrot.slane %v2659_v63, 9  ;;  %v735_v51 = vrot.slane %v2673_v22, 5  ;;  %p2470_p7 = por %p2469_p6, %p2468_p5 }
  0x5c   :  { %2067 = vmatpush3.bf16.msra.mxu1 %v2321_v8  ;;  %v1896_v8 = vrot.slane %v2618_v20, 9  ;;  %v163_v24 = vsel %vm2641_vm5, %v158_v6, %v162_v53  ;;  %v173_v26 = vsel %vm2641_vm5, %v168_v7, %v172_v58  ;;  %v177_v30 = vrot.slane %v175_v23, 4 }
  0x5d   :  { %2131 = vmatpush3.bf16.msra.mxu0 %v2322_v9  ;;  %2068 = vmatprep.subr.bf16.mxu1 %v2323_v10  ;;  %v725_v9 = vrot.slane %v2624_v25, 5  ;;  %v199_v55 = vshrl.u32 %v2682_v29, 16  ;;  %v3163_v58 = vshll.u32 %v2682_v29, 16  ;;  %v3161_v59 = vshll.u32 %v2689_v35, 16  ;;  %p2471_p8 = pnand %p2470_p7, %p2464_p4 }
  0x5e   :  { %2132 = vmatprep.subr.bf16.mxu0 %v2324_v11  ;;  %v3162_v60 = vshrl.u32 %v2689_v35, 16  ;;  %vm2502_vm12 = vmmov 0   ;;  %vm1741_vm13 = vcmask 1041409   ;;  %vm1743_vm14 = vcmask 1042434  }
  0x5f   :  { %v726_v27 = vsel %vm2614_vm4, %v1896_v8, %v725_v9  ;;  %v727_v28 = vrot.slane %v725_v9, 4  ;;  %v204_v8 = vrot.slane %v3163_v58, 5  ;;  %v210_v9 = vrot.slane %v3161_v59, 5  ;;  %v2830_v58 = vld [vmem:[#allocation2 + $0x78] sm:$0xf] }
  0x60   :  { %2069 = vmatpush3.bf16.msra.mxu1 %v2323_v10  ;;  %v2666_v10 = vld [vmem:[#allocation2 + $0x24] sm:$0xf]  ;;  %vm1745_vm15 = vcmask 1043459   ;;  %vm1747_vm0 = vcmask 1044484   ;;  %vm1749_vm1 = vcmask 1045509   ;;  %vm1751_vm2 = vcmask 1046534  }
  0x61   :  { %2133 = vmatpush3.bf16.msra.mxu0 %v2324_v11  ;;  %2070 = vmatprep.subr.bf16.mxu1 %v2325_v31  ;;  %v2668_v11 = vrot.slane %v1009_v3, 5  ;;  %v729_v36 = vsel %vm2614_vm4, %v727_v28, %v728_v21  ;;  %v184_v38 = vshll.u32 %v2666_v10, 16  ;;  %v188_v39 = vshrl.u32 %v2666_v10, 16  ;;  %v2724_v21 = vld [vmem:[#allocation2 + $0x40] sm:$0xf] }
  0x62   :  { %2134 = vmatprep.subr.bf16.mxu0 %v2326_v32  ;;  %v1904_v43 = vcombine.low %v726_v27, %v729_v36  ;;  %v732_v47 = vrot.slane %v2666_v10, 5  ;;  %v3156_v3 = vshll.u32 %v2696_v42, 16  ;;  %v1898_v28 = vrot.slane %v2682_v29, 9 }
  0x63   :  { %v186_v48 = vrot.slane %v184_v38, 5  ;;  %v190_v49 = vrot.slane %v188_v39, 4  ;;  %vm1753_vm3 = vcmask 1047559  }
  0x64   :  { %2071 = vmatpush3.bf16.msra.mxu1 %v2325_v31  ;;  %v1864_v31 = vcombine.low %v163_v24, %v173_v26  ;;  %v733_v53 = vsel %vm2614_vm4, %v1897_v46, %v732_v47  ;;  %v734_v54 = vrot.slane %v732_v47, 4  ;;  %v214_v26 = vrot.slane %v3162_v60, 4  ;;  %v2336_v46 = vld [vmem:[#allocation5 + $0xd8] sm:$0xff]   ;;  %v2739_v47 = vld [vmem:[#allocation2 + $0x48] sm:$0xf] }
  0x65   :  { %2135 = vmatpush3.bf16.msra.mxu0 %v2326_v32  ;;  %2072 = vmatprep.subr.bf16.mxu1 %v2327_v45  ;;  %v2684_v32 = vor.u32 %v1005_v2, %v1004_v1  ;;  %v191_v56 = vor.u32 %v190_v49, %v186_v48  ;;  %v201_v2 = vrot.slane %v199_v55, 4  ;;  %v220_v27 = vrot.slane %v3156_v3, 5 }
  0x66   :  { %2136 = vmatprep.subr.bf16.mxu0 %v2328_v50  ;;  %v736_v1 = vsel %vm2614_vm4, %v734_v54, %v735_v51  ;;  %v215_v49 = vor.u32 %v214_v26, %v210_v9  ;;  %v3154_v51 = vshrl.u32 %v2724_v21, 16 }
  0x67   :  { %v192_v6 = vrot.slane %v191_v56, 4  ;;  %v1905_v7 = vcombine.low %v733_v53, %v736_v1  ;;  %v205_v36 = vor.u32 %v204_v8, %v201_v2  ;;  %v2746_v56 = vld [vmem:[#allocation2 + $0x50] sm:$0xf]  ;;  %v2337_v8 = vld [vmem:[#allocation5 + $0x20] sm:$0xff]  }
  0x68   :  { %2073 = vmatpush3.bf16.msra.mxu1 %v2327_v45  ;;  %v180_v45 = vrot.slane %v178_v33, 5  ;;  %v225_v1 = vrot.slane %v3154_v51, 4 }
  0x69   :  { %2137 = vmatpush3.bf16.msra.mxu0 %v2328_v50  ;;  %2090 = vmatprep.subr.bf16.mxu1 %v2329_v4  ;;  %v196_v50 = vrot.slane %v194_v41, 5 }
  0x6a   :  { %2154 = vmatprep.subr.bf16.mxu0 %v2330_v5  ;;  %v181_v52 = vor.u32 %v180_v45, %v177_v30  ;;  %v2335_v45 = vld [vmem:[#allocation5 + $0x18] sm:$0xff]  }
  0x6b   :  { %2075 = vmatmul.mubr.bf16.vlgmr.msra.gmra.mrb[0].mxu1 %v1864_v31  ;;  %v2733_v31 = vld [vmem:[#allocation2 + $0x44] sm:$0xf]  ;;  %v197_v30 = vsel %vm2641_vm5, %v192_v6, %v196_v50 }
  0x6c   :  { %2139 = vmatmul.mubr.bf16.vlgmr.msra.gmra.mrb[0].mxu0 %v1904_v43  ;;  %2091 = vmatpush3.bf16.msra.mxu1 %v2329_v4  ;;  %v182_v61 = vrot.slane %v181_v52, 4  ;;  %v2333_v4 = vld [vmem:[#allocation5 + $0x10] sm:$0xff]   ;;  %v742_v43 = vrot.slane %v2696_v42, 5  ;;  %v206_v52 = vrot.slane %v205_v36, 4  ;;  %v3148_v54 = vshll.u32 %v2733_v31, 16 }
  0x6d   :  { %2155 = vmatpush3.bf16.msra.mxu0 %v2330_v5  ;;  %2092 = vmatprep.subr.bf16.mxu1 %v2331_v37  ;;  %v2334_v5 = vld [vmem:[#allocation5 + $0xd0] sm:$0xff]   ;;  %v3151_v6 = vshrl.u32 %v2733_v31, 16 }
  0x6e   :  { %2156 = vmatprep.subr.bf16.mxu0 %v2332_v44  ;;  %v187_v24 = vsel %vm2641_vm5, %v182_v61, %v186_v48  ;;  %2142 = vmatprep.mubr.bf16.mxu0 %v1905_v7  ;;  %v216_v61 = vrot.slane %v215_v49, 4  ;;  %v2753_v7 = vld [vmem:[#allocation2 + $0x54] sm:$0xf] }
  0x6f   :  { %v1865_v48 = vcombine.low %v187_v24, %v197_v30  ;;  %v211_v24 = vsel %vm2641_vm5, %v206_v52, %v210_v9  ;;  %v2338_v9 = vld [vmem:[#allocation5 + $0xe0] sm:$0xff]   ;;  %v746_v52 = vrot.slane %v2733_v31, 5  ;;  %v753_v3 = vrot.slane %v2753_v7, 5 }
  0x70   :  { %2093 = vmatpush3.bf16.msra.mxu1 %v2331_v37  ;;  %v739_v37 = vrot.slane %v2689_v35, 5  ;;  %v221_v30 = vsel %vm2641_vm5, %v216_v61, %v220_v27  ;;  %v749_v27 = vrot.slane %v2739_v47, 5  ;;  %v3149_v61 = vshrl.u32 %v2746_v56, 16 }
  0x71   :  { %2157 = vmatpush3.bf16.msra.mxu0 %v2332_v44  ;;  %2094 = vmatprep.subr.bf16.mxu1 %v2333_v4  ;;  %v3152_v44 = vshll.u32 %v2724_v21, 16  ;;  %v1866_v49 = vcombine.low %v211_v24, %v221_v30  ;;  %v3153_v24 = vshll.u32 %v2746_v56, 16  ;;  %v2339_v30 = vld [vmem:[#allocation5 + $0x28] sm:$0xff]  }
  0x72   :  { %2158 = vmatprep.subr.bf16.mxu0 %v2334_v5  ;;  %v740_v50 = vsel %vm2614_vm4, %v1898_v28, %v739_v37  ;;  %v741_v53 = vrot.slane %v739_v37, 4  ;;  %2078 = vmatprep.mubr.bf16.mxu1 %v1865_v48  ;;  %v3150_v28 = vshll.u32 %v2739_v47, 16  ;;  %v238_v48 = vrot.slane %v3151_v6, 4 }
  0x73   :  { %v228_v2 = vrot.slane %v3152_v44, 5  ;;  %2079 = vmatmul.mubr.bf16.gmra.mrb[4].mxu1 %v1866_v49  ;;  %v2783_v49 = vld [vmem:[#allocation2 + $0x60] sm:$0xf] }
  0x74   :  { %2095 = vmatpush3.bf16.msra.mxu1 %v2333_v4  ;;  %v743_v26 = vsel %vm2614_vm4, %v741_v53, %v742_v43  ;;  %v234_v4 = vrot.slane %v3148_v54, 5  ;;  %v1899_v43 = vrot.slane %v2724_v21, 9 }
  0x75   :  { %2159 = vmatpush3.bf16.msra.mxu0 %v2334_v5  ;;  %2096 = vmatprep.subr.bf16.mxu1 %v2335_v45  ;;  %v1906_v36 = vcombine.low %v740_v50, %v743_v26  ;;  %v229_v37 = vor.u32 %v228_v2, %v225_v1  ;;  %v244_v5 = vrot.slane %v3150_v28, 5  ;;  %v2771_v50 = vld [vmem:[#allocation2 + $0x58] sm:$0xf]  ;;  %v748_v2 = vrot.slane %v746_v52, 4 }
  0x76   :  { %2160 = vmatprep.subr.bf16.mxu0 %v2336_v46  ;;  %v239_v54 = vor.u32 %v238_v48, %v234_v4  ;;  %v747_v1 = vsel %vm2614_vm4, %v1899_v43, %v746_v52  ;;  %v3155_v26 = vshll.u32 %v2753_v7, 16  ;;  %v3158_v48 = vshrl.u32 %v2753_v7, 16 }
  0x77   :  { %2143 = vmatmul.mubr.bf16.gmra.mrb[4].mxu0 %v1906_v36  ;;  %v230_v53 = vrot.slane %v229_v37, 4  ;;  %v249_v37 = vrot.slane %v3149_v61, 4  ;;  %v750_v43 = vsel %vm2614_vm4, %v748_v2, %v749_v27  ;;  %v252_v52 = vrot.slane %v3153_v24, 5  ;;  %v2341_v61 = vld [vmem:[#allocation5 + $0x30] sm:$0xff]   ;;  %v2799_v2 = vld [vmem:[#allocation2 + $0x68] sm:$0xf] }
  0x78   :  { %2097 = vmatpush3.bf16.msra.mxu1 %v2335_v45  ;;  %v240_v36 = vrot.slane %v239_v54, 4  ;;  %v3157_v54 = vshll.u32 %v2771_v50, 16  ;;  %v1907_v6 = vcombine.low %v747_v1, %v750_v43  ;;  %v262_v44 = vrot.slane %v3158_v48, 4  ;;  %v2342_v43 = vld [vmem:[#allocation5 + $0xf0] sm:$0xff]  }
  0x79   :  { %2161 = vmatpush3.bf16.msra.mxu0 %v2336_v46  ;;  %v235_v45 = vsel %vm2641_vm5, %v230_v53, %v234_v4  ;;  %2098 = vmatprep.subr.bf16.mxu1 %v2337_v8  ;;  %v2340_v46 = vld [vmem:[#allocation5 + $0xe8] sm:$0xff]   ;;  %v258_v4 = vrot.slane %v3155_v26, 5  ;;  %v2792_v53 = vld [vmem:[#allocation2 + $0x64] sm:$0xf]  ;;  %v1900_v27 = vrot.slane %v2746_v56, 9  ;;  %v253_v51 = vor.u32 %v252_v52, %v249_v37 }
  0x7a   :  { %2162 = vmatprep.subr.bf16.mxu0 %v2338_v9  ;;  %v245_v28 = vsel %vm2641_vm5, %v240_v36, %v244_v5  ;;  %v268_v26 = vrot.slane %v3157_v54, 5  ;;  %2146 = vmatprep.mubr.bf16.mxu0 %v1907_v6  ;;  %v756_v1 = vrot.slane %v2771_v50, 5  ;;  %v3160_v36 = vshrl.u32 %v2783_v49, 16 }
  0x7b   :  { %v1867_v24 = vcombine.low %v235_v45, %v245_v28  ;;  %v263_v5 = vor.u32 %v262_v44, %v258_v4  ;;  %v254_v28 = vrot.slane %v253_v51, 4  ;;  %v754_v45 = vsel %vm2614_vm4, %v1900_v27, %v753_v3  ;;  %v2343_v51 = vld [vmem:[#allocation5 + $0x38] sm:$0xff]  }
  0x7c   :  { %2099 = vmatpush3.bf16.msra.mxu1 %v2337_v8  ;;  %v3159_v8 = vshll.u32 %v2783_v49, 16  ;;  %v755_v37 = vrot.slane %v753_v3, 4  ;;  %v3166_v52 = vshll.u32 %v2792_v53, 16  ;;  %v273_v44 = vrot.slane %v3160_v36, 4 }
  0x7d   :  { %2163 = vmatpush3.bf16.msra.mxu0 %v2338_v9  ;;  %2100 = vmatprep.subr.bf16.mxu1 %v2339_v30  ;;  %v2810_v9 = vld [vmem:[#allocation2 + $0x70] sm:$0xf]  ;;  %v264_v6 = vrot.slane %v263_v5, 4  ;;  %v284_v48 = vshrl.u32 %v2792_v53, 16  ;;  %v259_v3 = vsel %vm2641_vm5, %v254_v28, %v258_v4  ;;  %v3164_v5 = vshll.u32 %v2799_v2, 16  ;;  %v2344_v4 = vld [vmem:[#allocation5 + $0xf8] sm:$0xff]  }
  0x7e   :  { %2164 = vmatprep.subr.bf16.mxu0 %v2340_v46  ;;  %2082 = vmatprep.mubr.bf16.mxu1 %v1867_v24  ;;  %v276_v54 = vrot.slane %v3159_v8, 5  ;;  %v2817_v24 = vld [vmem:[#allocation2 + $0x74] sm:$0xf]  ;;  %v757_v27 = vsel %vm2614_vm4, %v755_v37, %v756_v1  ;;  %v1901_v28 = vrot.slane %v2783_v49, 9  ;;  %v760_v37 = vrot.slane %v2792_v53, 5 }
  0x7f   :  { %v269_v8 = vsel %vm2641_vm5, %v264_v6, %v268_v26  ;;  %v1908_v36 = vcombine.low %v754_v45, %v757_v27  ;;  %v286_v60 = vrot.slane %v284_v48, 4  ;;  %v763_v45 = vrot.slane %v2799_v2, 5 }
  0x80   :  { %2101 = vmatpush3.bf16.msra.mxu1 %v2339_v30  ;;  %v282_v30 = vrot.slane %v3166_v52, 5  ;;  %v277_v59 = vor.u32 %v276_v54, %v273_v44  ;;  %v1868_v1 = vcombine.low %v259_v3, %v269_v8  ;;  %v3165_v6 = vshrl.u32 %v2810_v9, 16 }
  0x81   :  { %2165 = vmatpush3.bf16.msra.mxu0 %v2340_v46  ;;  %2102 = vmatprep.subr.bf16.mxu1 %v2341_v61  ;;  %v292_v46 = vrot.slane %v3164_v5, 5  ;;  %v761_v8 = vsel %vm2614_vm4, %v1901_v28, %v760_v37  ;;  %v762_v44 = vrot.slane %v760_v37, 4  ;;  %v3167_v3 = vshll.u32 %v2810_v9, 16 }
  0x82   :  { %2166 = vmatprep.subr.bf16.mxu0 %v2342_v43  ;;  %2147 = vmatmul.mubr.bf16.gmra.mrb[8].mxu0 %v1908_v36  ;;  %v278_v26 = vrot.slane %v277_v59, 4  ;;  %v287_v54 = vor.u32 %v286_v60, %v282_v30  ;;  %v3168_v27 = vshll.u32 %v2817_v24, 16  ;;  %v297_v60 = vrot.slane %v3165_v6, 4 }
  0x83   :  { %2083 = vmatmul.mubr.bf16.gmra.mrb[8].mxu1 %v1868_v1  ;;  %v308_v5 = vshrl.u32 %v2817_v24, 16  ;;  %v764_v1 = vsel %vm2614_vm4, %v762_v44, %v763_v45  ;;  %v300_v28 = vrot.slane %v3167_v3, 5  ;;  %v1902_v6 = vrot.slane %v2810_v9, 9 }
  0x84   :  { %2103 = vmatpush3.bf16.msra.mxu1 %v2341_v61  ;;  %v283_v36 = vsel %vm2641_vm5, %v278_v26, %v282_v30  ;;  %v288_v59 = vrot.slane %v287_v54, 4  ;;  %v2847_v61 = vld [vmem:[#allocation5 + $0x100] sm:$0xff]   ;;  %v314_v30 = vshll.u32 %v2830_v58, 16  ;;  %v1909_v26 = vcombine.low %v761_v8, %v764_v1 }
  0x85   :  { %2167 = vmatpush3.bf16.msra.mxu0 %v2342_v43  ;;  %2104 = vmatprep.subr.bf16.mxu1 %v2343_v51  ;;  %v306_v43 = vrot.slane %v3168_v27, 5  ;;  %v310_v54 = vrot.slane %v308_v5, 4  ;;  %v301_v45 = vor.u32 %v300_v28, %v297_v60  ;;  %v767_v3 = vrot.slane %v2817_v24, 5 }
  0x86   :  { %2168 = vmatprep.subr.bf16.mxu0 %v2344_v4  ;;  %v293_v37 = vsel %vm2641_vm5, %v288_v59, %v292_v46  ;;  %v316_v44 = vrot.slane %v314_v30, 5  ;;  %v1013_v27 = vor.u32 %v2670_v17, %v2668_v11  ;;  %2150 = vmatprep.mubr.bf16.mxu0 %v1909_v26  ;;  %v770_v8 = vrot.slane %v2830_v58, 5 }
  0x87   :  { %v1869_v52 = vcombine.low %v283_v36, %v293_v37  ;;  %v311_v46 = vor.u32 %v310_v54, %v306_v43  ;;  %v985_v59 = vrot.slane %v127_v15, 5  ;;  %v768_v36 = vsel %vm2614_vm4, %v1902_v6, %v767_v3 }
  0x88   :  { %2105 = vmatpush3.bf16.msra.mxu1 %v2343_v51  ;;  %v302_v51 = vrot.slane %v301_v45, 4  ;;  %v769_v60 = vrot.slane %v767_v3, 4  ;;  %v1879_v11 = vcombine.low %v2603_v12, %v2605_v13  ;;  %v989_v17 = vrot.slane %v140_v18, 5 }
  0x89   :  { %2169 = vmatpush3.bf16.msra.mxu0 %v2344_v4  ;;  %2086 = vmatprep.mubr.bf16.mxu1 %v1869_v52  ;;  %v986_v4 = vrot.slane %v130_v16, 6  ;;  %v312_v1 = vrot.slane %v311_v46, 4  ;;  %v994_v15 = vshrl.u32 %v2607_v14, 16  ;;  %v1002_v3 = vor.u32 %v2661_v0, %v2657_v62 }
  0x8a   :  { %2186 = vmatprep.subr.bf16.mxu0 %v2847_v61  ;;  %v307_v52 = vsel %vm2641_vm5, %v302_v51, %v306_v43  ;;  %v771_v28 = vsel %vm2614_vm4, %v769_v60, %v770_v8  ;;  %v991_v13 = vor.u32 %v2634_v34, %v989_v17  ;;  %v1008_v26 = vrot.slane %v2684_v32, 4 }
  0x8b   :  { %v987_v6 = vor.u32 %v986_v4, %v985_v59  ;;  %v317_v16 = vsel %vm2641_vm5, %v312_v1, %v316_v44  ;;  %v1910_v37 = vcombine.low %v768_v36, %v771_v28  ;;  %v996_v14 = vrot.slane %v994_v15, 5 }
  0x8c   :  { %v1870_v18 = vcombine.low %v307_v52, %v317_v16  ;;  %v1003_v43 = vrot.slane %v1002_v3, 4  ;;  %v993_v62 = vrot.slane %v991_v13, 4  ;;  %v1880_v0 = vcombine.low %v2618_v20, %v2624_v25  ;;  %v2348_v52 = vld [vmem:[#allocation5 + $0x108] sm:$0xff]  }
  0x8d   :  { %v988_v19 = vrot.slane %v987_v6, 4  ;;  %2151 = vmatmul.mubr.bf16.gmra.mrb[12].mxu0 %v1910_v37  ;;  %v998_v40 = vor.u32 %v2655_v57, %v996_v14  ;;  %v1015_v54 = vrot.slane %v175_v23, 5  ;;  %v1014_v44 = vsel %vm2889_vm8, %v1008_v26, %v1013_v27 }
  0x8e   :  { %2087 = vmatmul.mubr.bf16.gmra.mrb[12].mxu1 %v1870_v18  ;;  %v1007_v45 = vsel %vm2889_vm8, %v1003_v43, %v2684_v32  ;;  %v1016_v57 = vrot.slane %v178_v33, 6  ;;  %v1881_v25 = vcombine.low %v2659_v63, %v2666_v10  ;;  %v1019_v23 = vrot.slane %v188_v39, 5 }
  0x8f   :  { %v992_v34 = vsel %vm2889_vm8, %v988_v19, %v991_v13  ;;  %2106 = vmatprep.mubr.bf16.mxu1 %v1879_v11  ;;  %v999_v20 = vsel %vm2889_vm8, %v993_v62, %v998_v40  ;;  %v1020_v46 = vrot.slane %v184_v38, 6  ;;  %v1024_v27 = vshrl.u32 %v2673_v22, 16 }
  0x90   :  { %v1919_v32 = vcombine.low %v992_v34, %v999_v20  ;;  %v1017_v8 = vor.u32 %v1016_v57, %v1015_v54  ;;  %v1027_v33 = vrot.slane %v194_v41, 6  ;;  %v1920_v59 = vcombine.low %v1007_v45, %v1014_v44 }
  0x91   :  { %v1021_v51 = vor.u32 %v1020_v46, %v1019_v23  ;;  %v1030_v36 = vrot.slane %v199_v55, 5  ;;  %v3175_v60 = vshll.u32 %v2682_v29, 16  ;;  %v1026_v1 = vrot.slane %v1024_v27, 5 }
  0x92   :  { %2170 = vmatprep.mubr.bf16.mxu0 %v1919_v32  ;;  %v1018_v39 = vrot.slane %v1017_v8, 4  ;;  %v3176_v38 = vshrl.u32 %v2689_v35, 16  ;;  %v3177_v17 = vshll.u32 %v2689_v35, 16  ;;  %v1039_v6 = vshrl.u32 %v2696_v42, 16 }
  0x93   :  { %v1031_v4 = vrot.slane %v3175_v60, 6  ;;  %v1023_v28 = vrot.slane %v1021_v51, 4  ;;  %v3178_v3 = vshll.u32 %v2696_v42, 16  ;;  %v1028_v37 = vor.u32 %v1027_v33, %v1026_v1 }
  0x94   :  { %v1034_v11 = vrot.slane %v3176_v38, 5  ;;  %v1035_v15 = vrot.slane %v3177_v17, 6  ;;  %v1022_v16 = vsel %vm2889_vm8, %v1018_v39, %v1021_v51  ;;  %v1882_v13 = vcombine.low %v2682_v29, %v2689_v35 }
  0x95   :  { %v1032_v41 = vor.u32 %v1031_v4, %v1030_v36  ;;  %v1042_v55 = vrot.slane %v3178_v3, 6  ;;  %2171 = vmatmul.mubr.bf16.vlgmr.msra.gmra.mrb[0].mxu0 %v1920_v59  ;;  %v1041_v19 = vrot.slane %v1039_v6, 5  ;;  %v3179_v43 = vshrl.u32 %v2724_v21, 16 }
  0x96   :  { %v1036_v14 = vor.u32 %v1035_v15, %v1034_v11  ;;  %v3180_v62 = vshll.u32 %v2724_v21, 16  ;;  %2107 = vmatmul.mubr.bf16.vlgmr.msra.gmra.mrb[0].mxu1 %v1880_v0  ;;  %2187 = vmatpush3.bf16.msra.mxu0 %v2847_v61  ;;  %v1029_v54 = vsel %vm2889_vm8, %v1023_v28, %v1028_v37  ;;  %v3181_v45 = vshrl.u32 %v2733_v31, 16  ;;  %v2351_v0 = vld [vmem:[#allocation5 + $0x110] sm:$0xff]  }
  0x97   :  { %v1033_v18 = vrot.slane %v1032_v41, 4  ;;  %v1045_v26 = vrot.slane %v3179_v43, 5  ;;  %v3182_v57 = vshll.u32 %v2733_v31, 16  ;;  %2188 = vmatprep.subr.bf16.mxu0 %v2348_v52  ;;  %2110 = vmatprep.mubr.bf16.mxu1 %v1881_v25  ;;  %v1921_v23 = vcombine.low %v1022_v16, %v1029_v54  ;;  %v2352_v41 = vld [vmem:[#allocation5 + $0x118] sm:$0xff]  }
  0x98   :  { %v1046_v40 = vrot.slane %v3180_v62, 6  ;;  %v1038_v34 = vrot.slane %v1036_v14, 4  ;;  %v1049_v44 = vrot.slane %v3181_v45, 5  ;;  %v1043_v32 = vor.u32 %v1042_v55, %v1041_v19 }
  0x99   :  { %v1050_v20 = vrot.slane %v3182_v57, 6  ;;  %v1037_v46 = vsel %vm2889_vm8, %v1033_v18, %v1036_v14  ;;  %v1054_v61 = vshrl.u32 %v2739_v47, 16  ;;  %v1883_v8 = vcombine.low %v2724_v21, %v2733_v31  ;;  %2174 = vmatprep.mubr.bf16.mxu0 %v1921_v23 }
  0x9a   :  { %v1047_v27 = vor.u32 %v1046_v40, %v1045_v26  ;;  %v3183_v59 = vshll.u32 %v2739_v47, 16  ;;  %v1044_v25 = vsel %vm2889_vm8, %v1038_v34, %v1043_v32  ;;  %v3184_v60 = vshrl.u32 %v2746_v56, 16  ;;  %2189 = vmatpush3.bf16.msra.mxu0 %v2348_v52 }
  0x9b   :  { %v1051_v33 = vor.u32 %v1050_v20, %v1049_v44  ;;  %v1056_v36 = vrot.slane %v1054_v61, 5  ;;  %v3185_v39 = vshll.u32 %v2746_v56, 16  ;;  %v1922_v38 = vcombine.low %v1037_v46, %v1044_v25  ;;  %2190 = vmatprep.subr.bf16.mxu0 %v2351_v0 }
  0x9c   :  { %v1057_v51 = vrot.slane %v3183_v59, 6  ;;  %v1060_v4 = vrot.slane %v3184_v60, 5  ;;  %v1048_v11 = vrot.slane %v1047_v27, 4  ;;  %v3186_v15 = vshrl.u32 %v2753_v7, 16 }
  0x9d   :  { %v1061_v1 = vrot.slane %v3185_v39, 6  ;;  %v1053_v17 = vrot.slane %v1051_v33, 4  ;;  %v3187_v55 = vshll.u32 %v2753_v7, 16  ;;  %v1069_v37 = vshrl.u32 %v2771_v50, 16  ;;  %2175 = vmatmul.mubr.bf16.gmra.mrb[4].mxu0 %v1922_v38 }
  0x9e   :  { %v1064_v28 = vrot.slane %v3186_v15, 5  ;;  %v1058_v6 = vor.u32 %v1057_v51, %v1056_v36  ;;  %v1052_v52 = vsel %vm2889_vm8, %v1048_v11, %v1051_v33  ;;  %v1884_v14 = vcombine.low %v2746_v56, %v2753_v7  ;;  %2111 = vmatmul.mubr.bf16.gmra.mrb[4].mxu1 %v1882_v13  ;;  %2191 = vmatpush3.bf16.msra.mxu0 %v2351_v0  ;;  %v2355_v33 = vld [vmem:[#allocation5 + $0x120] sm:$0xff]  }
  0x9f   :  { %v1062_v3 = vor.u32 %v1061_v1, %v1060_v4  ;;  %v1065_v16 = vrot.slane %v3187_v55, 6  ;;  %v3188_v18 = vshll.u32 %v2771_v50, 16  ;;  %v3189_v43 = vshrl.u32 %v2783_v49, 16  ;;  %2192 = vmatprep.subr.bf16.mxu0 %v2352_v41  ;;  %2114 = vmatprep.mubr.bf16.mxu1 %v1883_v8 }
  0xa0   :  { %v1059_v62 = vsel %vm2889_vm8, %v1053_v17, %v1058_v6  ;;  %v1071_v34 = vrot.slane %v1069_v37, 5  ;;  %v3190_v44 = vshll.u32 %v2783_v49, 16  ;;  %v1079_v20 = vrot.slane %v284_v48, 5 }
  0xa1   :  { %v1072_v19 = vrot.slane %v3188_v18, 6  ;;  %v1075_v26 = vrot.slane %v3189_v43, 5  ;;  %v1063_v40 = vrot.slane %v1062_v3, 4  ;;  %v1066_v54 = vor.u32 %v1065_v16, %v1064_v28  ;;  %v2356_v28 = vld [vmem:[#allocation5 + $0x128] sm:$0xff]   ;;  %v2369_v18 = vld [vmem:[#allocation2] sm:$0xf] }
  0xa2   :  { %v1923_v45 = vcombine.low %v1052_v52, %v1059_v62  ;;  %v1076_v57 = vrot.slane %v3190_v44, 6  ;;  %v3191_v23 = vshll.u32 %v2792_v53, 16  ;;  %v1084_v13 = vshrl.u32 %v2799_v2, 16  ;;  %2193 = vmatpush3.bf16.msra.mxu0 %v2352_v41  ;;  %v2370_v43 = vld [vmem:[#allocation2 + $0x4] sm:$0xf] }
  0xa3   :  { %v1067_v32 = vsel %vm2889_vm8, %v1063_v40, %v1066_v54  ;;  %v1068_v61 = vrot.slane %v1066_v54, 4  ;;  %v1073_v27 = vor.u32 %v1072_v19, %v1071_v34  ;;  %v1885_v0 = vcombine.low %v2783_v49, %v2792_v53  ;;  %2194 = vmatprep.subr.bf16.mxu0 %v2355_v33  ;;  %v2371_v44 = vld [vmem:[#allocation2 + $0x8] sm:$0xf] }
  0xa4   :  { %v1080_v46 = vrot.slane %v3191_v23, 6  ;;  %2178 = vmatprep.mubr.bf16.mxu0 %v1923_v45  ;;  %v1077_v59 = vor.u32 %v1076_v57, %v1075_v26  ;;  %v3192_v48 = vshll.u32 %v2799_v2, 16  ;;  %v1086_v36 = vrot.slane %v1084_v13, 5  ;;  %v2364_v34 = vld [vmem:[#allocation8 + $0x18] sm:$0xff]  }
  0xa5   :  { %v1074_v8 = vsel %vm2889_vm8, %v1068_v61, %v1073_v27  ;;  %v3193_v60 = vshrl.u32 %v2810_v9, 16  ;;  %v3194_v39 = vshll.u32 %v2810_v9, 16  ;;  %v1094_v15 = vrot.slane %v308_v5, 5  ;;  %v2372_v61 = vld [vmem:[#allocation2 + $0x10] sm:$0xf] }
  0xa6   :  { %v1081_v51 = vor.u32 %v1080_v46, %v1079_v20  ;;  %v1087_v25 = vrot.slane %v3192_v48, 6  ;;  %v1924_v38 = vcombine.low %v1067_v32, %v1074_v8  ;;  %v1078_v11 = vrot.slane %v1077_v59, 4  ;;  %2115 = vmatmul.mubr.bf16.gmra.mrb[8].mxu1 %v1884_v14  ;;  %2195 = vmatpush3.bf16.msra.mxu0 %v2355_v33  ;;  %v2359_v32 = vld [vmem:[#allocation5 + $0x130] sm:$0xff]  }
  0xa7   :  { %v1090_v4 = vrot.slane %v3193_v60, 5  ;;  %v1091_v1 = vrot.slane %v3194_v39, 6  ;;  %v3195_v55 = vshll.u32 %v2817_v24, 16  ;;  %v1099_v37 = vshrl.u32 %v2830_v58, 16  ;;  %2196 = vmatprep.subr.bf16.mxu0 %v2356_v28  ;;  %2118 = vmatprep.mubr.bf16.mxu1 %v1885_v0  ;;  %v2373_v33 = vld [vmem:[#allocation2 + $0x14] sm:$0xf] }
  0xa8   :  { %v1083_v17 = vrot.slane %v1081_v51, 4  ;;  %v1088_v6 = vor.u32 %v1087_v25, %v1086_v36  ;;  %v1082_v52 = vsel %vm2889_vm8, %v1078_v11, %v1081_v51  ;;  %v1102_v41 = vrot.slane %v314_v30, 6  ;;  %2179 = vmatmul.mubr.bf16.gmra.mrb[8].mxu0 %v1924_v38  ;;  %v2374_v51 = vld [vmem:[#allocation2 + $0x18] sm:$0xf] }
  0xa9   :  { %v1092_v3 = vor.u32 %v1091_v1, %v1090_v4  ;;  %v1095_v16 = vrot.slane %v3195_v55, 6  ;;  %v1935_v19 = vrot.slane %v2369_v18, 10  ;;  %v1320_v26 = vrot.slane %v2370_v43, 6  ;;  %v2360_v1 = vld [vmem:[#allocation5 + $0x138] sm:$0xff]  }
  0xaa   :  { %v1089_v5 = vsel %vm2889_vm8, %v1083_v17, %v1088_v6  ;;  %v1101_v54 = vrot.slane %v1099_v37, 5  ;;  %v1323_v57 = vrot.slane %v2371_v44, 6  ;;  %v1936_v27 = vrot.slane %v2372_v61, 10  ;;  %2197 = vmatpush3.bf16.msra.mxu0 %v2356_v28  ;;  %v2365_v61 = vld [vmem:[#allocation8 + $0x20] sm:$0xff]  }
  0xab   :  { %v1093_v62 = vrot.slane %v1092_v3, 4  ;;  %v1096_v40 = vor.u32 %v1095_v16, %v1094_v15  ;;  %v1925_v30 = vcombine.low %v1082_v52, %v1089_v5  ;;  %v1322_v45 = vrot.slane %v1320_v26, 4  ;;  %2198 = vmatprep.subr.bf16.mxu0 %v2359_v32 }
  0xac   :  { %v1103_v46 = vor.u32 %v1102_v41, %v1101_v54  ;;  %v1321_v13 = vsel %vm3006_vm11, %v1935_v19, %v1320_v26  ;;  %v1327_v59 = vrot.slane %v2373_v33, 6  ;;  %v1330_v48 = vrot.slane %v2374_v51, 6 }
  0xad   :  { %v1097_v20 = vsel %vm2889_vm8, %v1093_v62, %v1096_v40  ;;  %v1098_v23 = vrot.slane %v1096_v40, 4  ;;  %2182 = vmatprep.mubr.bf16.mxu0 %v1925_v30  ;;  %v1324_v14 = vsel %vm3006_vm11, %v1322_v45, %v1323_v57  ;;  %v1937_v25 = vrot.slane %v2659_v63, 10 }
  0xae   :  { %v1334_v8 = vrot.slane %v2666_v10, 6  ;;  %v1337_v36 = vrot.slane %v2673_v22, 6  ;;  %v1886_v60 = vcombine.low %v2810_v9, %v2817_v24  ;;  %v1329_v39 = vrot.slane %v1327_v59, 4  ;;  %2199 = vmatpush3.bf16.msra.mxu0 %v2359_v32  ;;  %v2363_v32 = vld [vmem:[#allocation8 + $0x10] sm:$0xff]  }
  0xaf   :  { %v1104_v0 = vsel %vm2889_vm8, %v1098_v23, %v1103_v46  ;;  %v1943_v38 = vcombine.low %v1321_v13, %v1324_v14  ;;  %v1328_v11 = vsel %vm3006_vm11, %v1936_v27, %v1327_v59  ;;  %v1341_v17 = vrot.slane %v2689_v35, 6  ;;  %2200 = vmatprep.subr.bf16.mxu0 %v2360_v1  ;;  %v2361_v23 = vld [vmem:[#allocation8] sm:$0xff]   ;;  %v2362_v46 = vld [vmem:[#allocation8 + $0x8] sm:$0xff]   ;;  %v2367_v13 = vld [vmem:[#allocation8 + $0x30] sm:$0xff]  }
  0xb0   :  { %v1926_v4 = vcombine.low %v1097_v20, %v1104_v0  ;;  %v1336_v12 = vrot.slane %v1334_v8, 4  ;;  %v1331_v63 = vsel %vm3006_vm11, %v1329_v39, %v1330_v48  ;;  %v1939_v10 = vrot.slane %v2724_v21, 10  ;;  %2119 = vmatmul.mubr.bf16.gmra.mrb[12].mxu1 %v1886_v60  ;;  %v2366_v27 = vld [vmem:[#allocation8 + $0x28] sm:$0xff]   ;;  %v2368_v14 = vld [vmem:[#allocation8 + $0x38] sm:$0xff]  }
  0xb1   :  { %v1348_v22 = vrot.slane %v2733_v31, 6  ;;  %v1351_v15 = vrot.slane %v2739_v47, 6  ;;  %v1335_v28 = vsel %vm3006_vm11, %v1937_v25, %v1334_v8  ;;  %v1938_v3 = vrot.slane %v2682_v29, 10 }
  0xb2   :  { %2183 = vmatmul.mubr.bf16.gmra.mrb[12].mxu0 %v1926_v4  ;;  %v1338_v6 = vsel %vm3006_vm11, %v1336_v12, %v1337_v36  ;;  %v1344_v35 = vrot.slane %v2696_v42, 6  ;;  %v1944_v55 = vcombine.low %v1328_v11, %v1331_v63  ;;  %v1940_v47 = vrot.slane %v2746_v56, 10  ;;  %v3081_v63 = vld [vmem:[%s3143_s2] ss:$0 sm:$0xff] }
  0xb3   :  { %v1349_v21 = vsel %vm3006_vm11, %v1939_v10, %v1348_v22  ;;  %v1350_v31 = vrot.slane %v1348_v22, 4  ;;  %2202 = vmatprep.mubr.bf16.mxu0 %v1943_v38  ;;  %v1343_v16 = vrot.slane %v1341_v17, 4  ;;  %v1355_v37 = vrot.slane %v2753_v7, 6  ;;  %2201 = vmatpush3.bf16.msra.mxu0 %v2360_v1 }
  0xb4   :  { %v1358_v52 = vrot.slane %v2771_v50, 6  ;;  %v1941_v29 = vrot.slane %v2783_v49, 10  ;;  %v1945_v41 = vcombine.low %v1335_v28, %v1338_v6  ;;  %v1362_v18 = vrot.slane %v2792_v53, 6 }
  0xb5   :  { %v1352_v42 = vsel %vm3006_vm11, %v1350_v31, %v1351_v15  ;;  %v1365_v19 = vrot.slane %v2799_v2, 6  ;;  %v1356_v56 = vsel %vm3006_vm11, %v1940_v47, %v1355_v37  ;;  %v1357_v26 = vrot.slane %v1355_v37, 4  ;;  %v3086_v37 = vld [vmem:[#allocation7] sm:$0xff] }
  0xb6   :  { %v1947_v43 = vcombine.low %v1349_v21, %v1352_v42  ;;  %v1942_v5 = vrot.slane %v2810_v9, 10  ;;  %v1363_v7 = vsel %vm3006_vm11, %v1941_v29, %v1362_v18  ;;  %v1364_v50 = vrot.slane %v1362_v18, 4  ;;  %v3088_v29 = vld [vmem:[#allocation7 + $0x8] sm:$0xff] }
  0xb7   :  { %v1369_v49 = vrot.slane %v2817_v24, 6  ;;  %v1372_v62 = vrot.slane %v2830_v58, 6  ;;  %v1359_v53 = vsel %vm3006_vm11, %v1357_v26, %v1358_v52  ;;  %v1342_v45 = vsel %vm3006_vm11, %v1938_v3, %v1341_v17 }
  0xb8   :  { %v1948_v2 = vcombine.low %v1356_v56, %v1359_v53  ;;  %v1366_v40 = vsel %vm3006_vm11, %v1364_v50, %v1365_v19  ;;  %v1345_v58 = vsel %vm3006_vm11, %v1343_v16, %v1344_v35  ;;  %v2501_v20 = vmov 0.0  }
  0xb9   :  { %v1370_v54 = vsel %vm3006_vm11, %v1942_v5, %v1369_v49  ;;  %v1371_v9 = vrot.slane %v1369_v49, 4  ;;  %v1949_v30 = vcombine.low %v1363_v7, %v1366_v40  ;;  %v1946_v57 = vcombine.low %v1342_v45, %v1345_v58  ;;  %2218 = vmatprep.subr.bf16.mxu1 %v2501_v20  ;;  %2234 = vmatprep.mubr.msk.bf16.mxu1 %vm2502_vm12, %v2501_v20 }
  0xba   :  { %2203 = vmatmul.mubr.bf16.vlgmr.msra.gmra.mrb[0].mxu0 %v1944_v55  ;;  %2219 = vmatpush3.bf16.msra.mxu1 %v2361_v23 }
  0xbb   :  { %2206 = vmatprep.mubr.bf16.mxu0 %v1945_v41  ;;  %v1373_v24 = vsel %vm3006_vm11, %v1371_v9, %v1372_v62  ;;  %2220 = vmatprep.subr.bf16.mxu1 %v2501_v20 }
  0xbc   :  { %v1950_v44 = vcombine.low %v1370_v54, %v1373_v24 }
  0xbe   :  { %2221 = vmatpush3.bf16.msra.mxu1 %v2362_v46 }
  0xbf   :  { %2222 = vmatprep.subr.bf16.mxu1 %v2501_v20 }
  0xc2   :  { %2207 = vmatmul.mubr.bf16.gmra.mrb[4].mxu0 %v1946_v57  ;;  %2223 = vmatpush3.bf16.msra.mxu1 %v2363_v32 }
  0xc3   :  { %2210 = vmatprep.mubr.bf16.mxu0 %v1947_v43  ;;  %2224 = vmatprep.subr.bf16.mxu1 %v2501_v20 }
  0xc6   :  { %2225 = vmatpush3.bf16.msra.mxu1 %v2364_v34 }
  0xc7   :  { %2226 = vmatprep.subr.bf16.mxu1 %v2501_v20 }
  0xca   :  { %2211 = vmatmul.mubr.bf16.gmra.mrb[8].mxu0 %v1948_v2  ;;  %2227 = vmatpush3.bf16.msra.mxu1 %v2365_v61 }
  0xcb   :  { %2214 = vmatprep.mubr.bf16.mxu0 %v1949_v30  ;;  %2228 = vmatprep.subr.bf16.mxu1 %v2501_v20 }
  0xce   :  { %2229 = vmatpush3.bf16.msra.mxu1 %v2366_v27 }
  0xcf   :  { %2230 = vmatprep.subr.bf16.mxu1 %v2501_v20 }
  0xd2   :  { %2215 = vmatmul.mubr.bf16.gmra.mrb[12].mxu0 %v1950_v44  ;;  %2231 = vmatpush3.bf16.msra.mxu1 %v2367_v13 }
  0xd3   :  { %2232 = vmatprep.subr.bf16.mxu1 %v2501_v20 }
  0xd6   :  { %2233 = vmatpush3.bf16.msra.mxu1 %v2368_v14 }
 0x169   :  { %v2108_v33 = vpop.f32.mrb[0].mxu1 }
 0x16a   :  { %v642_v59 = vpop.f32.mrb[1].mxu1 }
 0x16b   :  { %v2109_v51 = vpop.f32.mrb[2].mxu1 }
 0x16c   :  { %v645_v48 = vpop.f32.mrb[3].mxu1 }
 0x171   :  { %v2112_v0 = vpop.f32.mrb[4].mxu1 }
 0x172   :  { %v658_v25 = vpop.f32.mrb[5].mxu1 }
 0x173   :  { %v2113_v8 = vpop.f32.mrb[6].mxu1 }
 0x174   :  { %v661_v36 = vpop.f32.mrb[7].mxu1 }
 0x179   :  { %v2116_v60 = vpop.f32.mrb[8].mxu1 }
 0x17a   :  { %v674_v4 = vpop.f32.mrb[9].mxu1 }
 0x17b   :  { %v3066_v39 = vpop.f32.mrb[10].mxu1 }
 0x17c   :  { %v3068_v1 = vpop.f32.mrb[11].mxu1 }
 0x183   :  { %v3070_v38 = vpop.f32.mrb[12].mxu1 }
 0x184   :  { %v3072_v11 = vpop.f32.mrb[13].mxu1 }
 0x185   :  { %v3074_v12 = vpop.f32.mrb[14].mxu1 }
 0x186   :  { %v3076_v17 = vpop.f32.mrb[15].mxu1 }
 0x18d   :  { %v2204_v10 = vpop.f32.mrb[0].mxu0 }
 0x18e   :  { %v2238_v22 = vadd.f32 %v2204_v10, %v2108_v33  ;;  %v1505_v15 = vpop.f32.mrb[1].mxu0 }
 0x18f   :  { %v2239_v28 = vadd.f32 %v1505_v15, %v642_v59  ;;  %v2205_v6 = vpop.f32.mrb[2].mxu0 }
 0x190   :  { %v1592_v3 = vadd.f32 %v2238_v22, %v3081_v63  ;;  %v2240_v35 = vadd.f32 %v2205_v6, %v2109_v51  ;;  %v1508_v55 = vpop.f32.mrb[3].mxu0 }
 0x191   :  { %v1590_v21 = vadd.f32 %v2239_v28, %v3081_v63  ;;  %v2241_v31 = vadd.f32 %v1508_v55, %v645_v48 }
 0x192   :  { %v1608_v47 = vmax.f32 %v1592_v3, 0.0  ;;  %v1593_v16 = vadd.f32 %v2240_v35, %v3081_v63 }
 0x193   :  { %v1606_v52 = vmax.f32 %v1590_v21, 0.0  ;;  %v1591_v41 = vadd.f32 %v2241_v31, %v3081_v63 }
 0x194   :  { %v1609_v42 = vmax.f32 %v1593_v16, 0.0  ;;  %v1624_v43 = vmul.f32 %v1608_v47, %v3086_v37 }
 0x195   :  { %v1607_v18 = vmax.f32 %v1591_v41, 0.0  ;;  %v2208_v19 = vpop.f32.mrb[4].mxu0  ;;  %v1622_v7 = vmul.f32 %v1606_v52, %v3086_v37 }
 0x196   :  { %v1625_v56 = vmul.f32 %v1609_v42, %v3088_v29  ;;  %v2242_v26 = vadd.f32 %v2208_v19, %v2112_v0  ;;  %v1521_v5 = vpop.f32.mrb[5].mxu0 }
 0x197   :  { %v1623_v50 = vmul.f32 %v1607_v18, %v3088_v29  ;;  %v2243_v49 = vadd.f32 %v1521_v5, %v658_v25  ;;  %v2209_v62 = vpop.f32.mrb[6].mxu0 }
 0x198   :  { %v1645_v53 = vmax.f32 %v1624_v43, %v1625_v56  ;;  %v1596_v2 = vadd.f32 %v2242_v26, %v3081_v63  ;;  %v2244_v40 = vadd.f32 %v2209_v62, %v2113_v8  ;;  %v1524_v54 = vpop.f32.mrb[7].mxu0 }
 0x199   :  { %v1638_v9 = vmax.f32 %v1622_v7, %v1623_v50  ;;  %v1594_v30 = vadd.f32 %v2243_v49, %v3081_v63  ;;  %v2245_v45 = vadd.f32 %v1524_v54, %v661_v36 }
 0x19a   :  { %v1646_v58 = vrot.slane %v1645_v53, 4  ;;  %v1612_v24 = vmax.f32 %v1596_v2, 0.0  ;;  %v1597_v44 = vadd.f32 %v2244_v40, %v3081_v63 }
 0x19b   :  { %v1639_v57 = vrot.slane %v1638_v9, 4  ;;  %v1610_v20 = vmax.f32 %v1594_v30, 0.0  ;;  %v1595_v23 = vadd.f32 %v2245_v45, %v3081_v63 }
 0x19c   :  { %v1647_v46 = vmax.f32 %v1645_v53, %v1646_v58  ;;  %v1613_v32 = vmax.f32 %v1597_v44, 0.0  ;;  %v1628_v14 = vmul.f32 %v1612_v24, %v3086_v37 }
 0x19d   :  { %v1640_v34 = vmax.f32 %v1638_v9, %v1639_v57  ;;  %v1611_v61 = vmax.f32 %v1595_v23, 0.0  ;;  %v2212_v27 = vpop.f32.mrb[8].mxu0  ;;  %v1626_v0 = vmul.f32 %v1610_v20, %v3086_v37 }
 0x19e   :  { %v1648_v13 = vrot.slane %v1647_v46, 2  ;;  %v1629_v33 = vmul.f32 %v1613_v32, %v3088_v29  ;;  %v2246_v59 = vadd.f32 %v2212_v27, %v2116_v60  ;;  %v1537_v51 = vpop.f32.mrb[9].mxu0 }
 0x19f   :  { %v1641_v48 = vrot.slane %v1640_v34, 2  ;;  %v1627_v25 = vmul.f32 %v1611_v61, %v3088_v29  ;;  %v2247_v8 = vadd.f32 %v1537_v51, %v674_v4  ;;  %v2213_v36 = vpop.f32.mrb[10].mxu0 }
 0x1a0   :  { %v1649_v10 = vmax.f32 %v1647_v46, %v1648_v13  ;;  %v1659_v22 = vmax.f32 %v1628_v14, %v1629_v33  ;;  %v1600_v15 = vadd.f32 %v2246_v59, %v3081_v63  ;;  %v2248_v28 = vadd.f32 %v2213_v36, %v3066_v39  ;;  %v1540_v6 = vpop.f32.mrb[11].mxu0 }
 0x1a1   :  { %v1642_v3 = vmax.f32 %v1640_v34, %v1641_v48  ;;  %v1652_v35 = vmax.f32 %v1626_v0, %v1627_v25  ;;  %v1598_v60 = vadd.f32 %v2247_v8, %v3081_v63  ;;  %v2249_v55 = vadd.f32 %v1540_v6, %v3068_v1 }
 0x1a2   :  { %v1650_v21 = vrot.slane %v1649_v10, 1  ;;  %v1660_v31 = vrot.slane %v1659_v22, 4  ;;  %v1616_v47 = vmax.f32 %v1600_v15, 0.0  ;;  %v1601_v4 = vadd.f32 %v2248_v28, %v3081_v63 }
 0x1a3   :  { %v1643_v16 = vrot.slane %v1642_v3, 1  ;;  %v1653_v52 = vrot.slane %v1652_v35, 4  ;;  %v1614_v41 = vmax.f32 %v1598_v60, 0.0  ;;  %v1599_v42 = vadd.f32 %v2249_v55, %v3081_v63 }
 0x1a4   :  { %v1651_v18 = vmax.f32 %v1649_v10, %v1650_v21  ;;  %v1661_v19 = vmax.f32 %v1659_v22, %v1660_v31  ;;  %v1632_v39 = vmul.f32 %v1616_v47, %v3086_v37  ;;  %v1617_v43 = vmax.f32 %v1601_v4, 0.0 }
 0x1a5   :  { %v1644_v56 = vmax.f32 %v1642_v3, %v1643_v16  ;;  %v1654_v26 = vmax.f32 %v1652_v35, %v1653_v52  ;;  %v1630_v5 = vmul.f32 %v1614_v41, %v3086_v37  ;;  %v1615_v1 = vmax.f32 %v1599_v42, 0.0  ;;  %v2216_v7 = vpop.f32.mrb[12].mxu0 }
 0x1a6   :  { %v1695_v50 = vpack.c.bf16 %v1651_v18, %v1651_v18  ;;  %v1662_v49 = vrot.slane %v1661_v19, 2  ;;  %v1633_v62 = vmul.f32 %v1617_v43, %v3088_v29  ;;  %v2250_v53 = vadd.f32 %v2216_v7, %v3070_v38  ;;  %v1553_v2 = vpop.f32.mrb[13].mxu0 }
 0x1a7   :  { %v1694_v40 = vpack.c.bf16 %v1644_v56, %v1644_v56  ;;  %v1655_v54 = vrot.slane %v1654_v26, 2  ;;  %v1631_v9 = vmul.f32 %v1615_v1, %v3088_v29  ;;  %v2251_v30 = vadd.f32 %v1553_v2, %v3072_v11  ;;  %v2217_v45 = vpop.f32.mrb[14].mxu0 }
 0x1a8   :  { %v1734_v58 = vunpack.c.l.b16 %v1695_v50  ;;  %v1663_v24 = vmax.f32 %v1661_v19, %v1662_v49  ;;  %v1673_v44 = vmax.f32 %v1632_v39, %v1633_v62  ;;  %v1604_v57 = vadd.f32 %v2250_v53, %v3081_v63  ;;  %v1556_v20 = vpop.f32.mrb[15].mxu0 }
 0x1a9   :  { %v1733_v23 = vunpack.c.l.b16 %v1694_v40  ;;  %v1656_v46 = vmax.f32 %v1654_v26, %v1655_v54  ;;  %v1666_v32 = vmax.f32 %v1630_v5, %v1631_v9  ;;  %v2252_v38 = vadd.f32 %v2217_v45, %v3074_v12 }
 0x1aa   :  { %v1664_v34 = vrot.slane %v1663_v24, 1  ;;  %v1674_v61 = vrot.slane %v1673_v44, 4  ;;  %v1602_v11 = vadd.f32 %v2251_v30, %v3081_v63  ;;  %v1620_v51 = vmax.f32 %v1604_v57, 0.0 }
 0x1ab   :  { %v1742_v27 = vsel %vm1741_vm13, %v1734_v58, %v1733_v23  ;;  %v1657_v13 = vrot.slane %v1656_v46, 1  ;;  %v1667_v14 = vrot.slane %v1666_v32, 4  ;;  %v1605_v48 = vadd.f32 %v2252_v38, %v3081_v63 }
 0x1ac   :  { %v1665_v33 = vmax.f32 %v1663_v24, %v1664_v34  ;;  %v1675_v59 = vmax.f32 %v1673_v44, %v1674_v61  ;;  %v2253_v8 = vadd.f32 %v1556_v20, %v3076_v17  ;;  %v1618_v28 = vmax.f32 %v1602_v11, 0.0 }
 0x1ad   :  { %v1658_v0 = vmax.f32 %v1656_v46, %v1657_v13  ;;  %v1668_v25 = vmax.f32 %v1666_v32, %v1667_v14  ;;  %v1621_v22 = vmax.f32 %v1605_v48, 0.0  ;;  %v1636_v35 = vmul.f32 %v1620_v51, %v3086_v37  ;;  %v1960_v32 = vld [vmem:[%s3146_s5] ss:$0 sm:$0xff] }
 0x1ae   :  { %v1697_v36 = vpack.c.bf16 %v1665_v33, %v1665_v33  ;;  %v1676_v10 = vrot.slane %v1675_v59, 2  ;;  %v1603_v6 = vadd.f32 %v2253_v8, %v3081_v63  ;;  %v1634_v41 = vmul.f32 %v1618_v28, %v3086_v37 }
 0x1af   :  { %v1696_v15 = vpack.c.bf16 %v1658_v0, %v1658_v0  ;;  %v1669_v12 = vrot.slane %v1668_v25, 2  ;;  %v1637_v60 = vmul.f32 %v1621_v22, %v3088_v29 }
 0x1b0   :  { %v1677_v3 = vmax.f32 %v1675_v59, %v1676_v10  ;;  %v1619_v31 = vmax.f32 %v1603_v6, 0.0  ;;  %v1736_v47 = vunpack.c.l.b16 %v1697_v36 }
 0x1b1   :  { %v1735_v55 = vunpack.c.l.b16 %v1696_v15  ;;  %v1670_v21 = vmax.f32 %v1668_v25, %v1669_v12  ;;  %v1687_v4 = vmax.f32 %v1636_v35, %v1637_v60 }
 0x1b2   :  { %v1678_v17 = vrot.slane %v1677_v3, 1  ;;  %v1635_v42 = vmul.f32 %v1619_v31, %v3088_v29 }
 0x1b3   :  { %v1744_v16 = vsel %vm1743_vm14, %v1735_v55, %v1742_v27  ;;  %v1671_v52 = vrot.slane %v1670_v21, 1  ;;  %v1688_v19 = vrot.slane %v1687_v4, 4 }
 0x1b4   :  { %v1679_v63 = vmax.f32 %v1677_v3, %v1678_v17  ;;  %v1746_v18 = vsel %vm1745_vm15, %v1736_v47, %v1744_v16  ;;  %v1680_v43 = vmax.f32 %v1634_v41, %v1635_v42 }
 0x1b5   :  { %v1672_v39 = vmax.f32 %v1670_v21, %v1671_v52  ;;  %v1689_v26 = vmax.f32 %v1687_v4, %v1688_v19 }
 0x1b6   :  { %v1699_v56 = vpack.c.bf16 %v1679_v63, %v1679_v63  ;;  %v1681_v1 = vrot.slane %v1680_v43, 4 }
 0x1b7   :  { %v1698_v5 = vpack.c.bf16 %v1672_v39, %v1672_v39  ;;  %v1690_v7 = vrot.slane %v1689_v26, 2 }
 0x1b8   :  { %v1682_v49 = vmax.f32 %v1680_v43, %v1681_v1  ;;  %v1738_v62 = vunpack.c.l.b16 %v1699_v56 }
 0x1b9   :  { %v1737_v50 = vunpack.c.l.b16 %v1698_v5  ;;  %v1691_v53 = vmax.f32 %v1689_v26, %v1690_v7 }
 0x1ba   :  { %v1683_v37 = vrot.slane %v1682_v49, 2 }
 0x1bb   :  { %v1748_v2 = vsel %vm1747_vm0, %v1737_v50, %v1746_v18  ;;  %v1692_v40 = vrot.slane %v1691_v53, 1 }
 0x1bc   :  { %v1750_v29 = vsel %vm1749_vm1, %v1738_v62, %v1748_v2  ;;  %v1684_v54 = vmax.f32 %v1682_v49, %v1683_v37 }
 0x1bd   :  { %v1693_v9 = vmax.f32 %v1691_v53, %v1692_v40 }
 0x1be   :  { %v1685_v30 = vrot.slane %v1684_v54, 1 }
 0x1bf   :  { %v1701_v58 = vpack.c.bf16 %v1693_v9, %v1693_v9 }
 0x1c0   :  { %v1686_v45 = vmax.f32 %v1684_v54, %v1685_v30 }
 0x1c1   :  { %v1740_v57 = vunpack.c.l.b16 %v1701_v58 }
 0x1c2   :  { %v1700_v24 = vpack.c.bf16 %v1686_v45, %v1686_v45 }
 0x1c4   :  { %v1739_v44 = vunpack.c.l.b16 %v1700_v24 }
 0x1c6   :  { %v1752_v20 = vsel %vm1751_vm2, %v1739_v44, %v1750_v29 }
 0x1c7   :  { %v1754_v23 = vsel %vm1753_vm3, %v1740_v57, %v1752_v20 }
 0x1c8   :  { %v1755_v46 = vpack.c.b16 %v1754_v23, %v1754_v23 }
 0x1ca   :  { %2235 = vmatmul.mubr.bf16.vlgmr.msra.gmra.mrb[16].mxu1 %v1755_v46 }
 0x29d   :  { %v1839_v34 = vpop.f32.mrb[16].mxu1 }
 0x29e   :  { %v1840_v61 = vadd.f32 %v1960_v32, %v1839_v34  ;;  %v2236_v38 = vpop.f32.mrb[17].mxu1 }
 0x29f   :  { %v1842_v27 = vpop.f32.mrb[18].mxu1 }
 0x2a0   :  { %1845 = vst [vmem:[#allocation10] sm:$0xff] %v1840_v61  ;;  %v2237_v13 = vpop.f32.mrb[19].mxu1 }
 0x2a1   :  { %2474 = shalt.err (!%p2471_p8)
}
 0x2a2   :  { %s2475_s5 = scalar_lea.hbm %s3147_s6, 128 }
 0x2a3   :  { %p2476_p9 = scmp.ne.s32.totalorder %s3147_s6, %s2475_s5  ;;  %p2479_p10 = scmp.lt.u32.totalorder %s2475_s5, %s3147_s6 }
 0x2a5   :  { %p2481_p11 = pnand %p2479_p10, %p2476_p9 }
 0x2a7   :  { %2484 = shalt.err (!%p2481_p11)
}
 0x2a8   :  { %1855 = dma.vmem_to_hbm [thread:$0]  %s1853_s25, 128, %s3147_s6, [#allocation4]  }
 0x2a9   :  { %2491 = dma.done.wait [#allocation4], 128  }
 0x2aa   :  { %2492 = vsyncadd [#allocation4], 4294967168 }
 0x2ab   :  { %1859 = vsyncpa [#allocation3], 1 }
 0x2ac   :  { %1860 = vsyncpa [#allocation6], 1 }
 0x2ad   :  { %1861 = vsyncpa [#allocation9], 1 }
 0x2ae   :  { %1862 = vsyncpa [#allocation4], 1 }

</bundles_post_ra>
